<compile_context>
chip_gen: v7x
topology: tpu7x:2x2x1
jax: 0.10.0
libtpu: 0.0.40
codegen_flags: <defaults>
</compile_context>

<pallas_src>
import jax
import jax.numpy as jnp
import numpy as np
from jax import lax
from jax.experimental import pallas as pl
from jax.experimental.pallas import tpu as pltpu


def _round_up(x, m):
    return ((x + m - 1) // m) * m


def make_rnn_kernel(T, B_tile, I, H, O_pad, L):
    """Kernel body. Layers are unrolled statically (truly sequential, each with
    its own weight refs); timesteps run in a fori_loop carrying h."""

    def kernel(*refs):
        # inputs: x (T,Bt,I), h0 (L,Bt,H), [wih_t, whh_t, b]*L, fc_w (H,O_pad), fc_b (1,O_pad)
        x_ref = refs[0]
        h0_ref = refs[1]
        idx = 2
        layer_refs = []
        for _ in range(L):
            layer_refs.append((refs[idx], refs[idx + 1], refs[idx + 2]))
            idx += 3
        fc_w_ref = refs[idx]
        fc_b_ref = refs[idx + 1]
        out_ref = refs[idx + 2]     # (T, Bt, O_pad)  lane-dense output slab
        hid_ref = refs[idx + 3]     # (L, Bt, H)      final hidden state
        buf_ref = refs[idx + 4]     # (T, Bt, H)      VMEM scratch (per-layer seq)

        for l in range(L):
            wih_t = layer_refs[l][0][...]     # (I_l, H)  pre-transposed W_ih
            whh_t = layer_refs[l][1][...]     # (H, H)    pre-transposed W_hh
            b = layer_refs[l][2][...]         # (1, H)    fused b_ih + b_hh

            # Batched input projection for ALL timesteps at once (off the
            # serial chain): z = layer_in @ W_ih^T + (b_ih + b_hh).
            if l == 0:
                inp = x_ref[...].reshape(T * B_tile, I)
            else:
                inp = buf_ref[...].reshape(T * B_tile, H)
            z = jnp.dot(inp, wih_t, preferred_element_type=jnp.float32) + b
            buf_ref[...] = z.reshape(T, B_tile, H)

            # Serial recurrence: one small matmul + add + tanh per step.
            # buf[t] holds z_t, is read, then overwritten with h_t in place, so
            # after the loop buf holds this layer's full output sequence.
            def step(t, h):
                zt = buf_ref[t]                               # (Bt, H) contiguous slab
                h_new = jnp.tanh(
                    zt + jnp.dot(h, whh_t, preferred_element_type=jnp.float32))
                buf_ref[t] = h_new
                return h_new

            h_last = lax.fori_loop(0, T, step, h0_ref[l], unroll=True)
            hid_ref[l] = h_last

        # Final Linear on the whole sequence, lane-dense (O padded to 128).
        feats = buf_ref[...].reshape(T * B_tile, H)           # row = t*Bt + b
        out = jnp.dot(feats, fc_w_ref[...], preferred_element_type=jnp.float32)
        out = out + fc_b_ref[...]
        out_ref[...] = out.reshape(T, B_tile, O_pad)

    return kernel


def rnn_forward(x, h0, layer_params, fc_w, fc_b):
    """Pallas wrapper. layer_params: list of (W_ih, W_hh, b_ih, b_hh) in
    PyTorch shapes. Returns (out, hidden) matching nn.RNN(batch_first=True)+Linear."""
    x = jnp.asarray(x, jnp.float32)
    h0 = jnp.asarray(h0, jnp.float32)
    B, T, I = x.shape
    L, _, H = h0.shape
    O = fc_w.shape[0]
    O_pad = _round_up(O, 128)

    # Batch tiling (degenerate: one tile at toy sizes).  For large B pick a
    # multiple of 8 so block sublane dims stay aligned; the "parallel" grid
    # axis then shards batch tiles across TensorCores (v7x) and bounds the
    # resident VMEM working set to (T, B_tile, H).
    B_tile = B
    n_btiles = pl.cdiv(B, B_tile)

    # Wrapper-side layout plumbing (outside the kernel):
    #   time-major input, pre-transposed weights, fused 2-D biases,
    #   fc weight/bias zero-padded to a lane-dense 128-wide output.
    x_tbi = jnp.swapaxes(x, 0, 1)                           # (T, B, I)

    kernel_inputs = [x_tbi, h0]
    in_specs = [
        pl.BlockSpec((T, B_tile, I), lambda i: (0, i, 0)),
        pl.BlockSpec((L, B_tile, H), lambda i: (0, i, 0)),
    ]
    flops = 0
    for (w_ih, w_hh, b_ih, b_hh) in layer_params:
        wih_t = jnp.asarray(w_ih, jnp.float32).T            # (I_l, H)
        whh_t = jnp.asarray(w_hh, jnp.float32).T            # (H, H)
        b = (jnp.asarray(b_ih, jnp.float32)
             + jnp.asarray(b_hh, jnp.float32)).reshape(1, H)
        kernel_inputs += [wih_t, whh_t, b]
        in_specs += [
            pl.BlockSpec(wih_t.shape, lambda i: (0, 0)),
            pl.BlockSpec(whh_t.shape, lambda i: (0, 0)),
            pl.BlockSpec(b.shape, lambda i: (0, 0)),
        ]
        I_l = wih_t.shape[0]
        flops += 2 * T * B * I_l * H + 2 * T * B * H * H

    fc_w_pad = jnp.zeros((H, O_pad), jnp.float32).at[:, :O].set(
        jnp.asarray(fc_w, jnp.float32).T)
    fc_b_pad = jnp.zeros((1, O_pad), jnp.float32).at[:, :O].set(
        jnp.asarray(fc_b, jnp.float32).reshape(1, O))
    kernel_inputs += [fc_w_pad, fc_b_pad]
    in_specs += [
        pl.BlockSpec((H, O_pad), lambda i: (0, 0)),
        pl.BlockSpec((1, O_pad), lambda i: (0, 0)),
    ]
    flops += 2 * T * B * H * O_pad

    bytes_accessed = 4 * (int(x.size) + int(h0.size)
                          + sum(int(a.size) for a in kernel_inputs[2:])
                          + T * B * O_pad + L * B * H)

    kernel = make_rnn_kernel(T, B_tile, I, H, O_pad, L)

    out_tb, hidden = pl.pallas_call(
        kernel,
        grid=(n_btiles,),
        in_specs=in_specs,
        out_specs=(
            pl.BlockSpec((T, B_tile, O_pad), lambda i: (0, i, 0)),
            pl.BlockSpec((L, B_tile, H), lambda i: (0, i, 0)),
        ),
        out_shape=(
            jax.ShapeDtypeStruct((T, B, O_pad), jnp.float32),
            jax.ShapeDtypeStruct((L, B, H), jnp.float32),
        ),
        scratch_shapes=[pltpu.VMEM((T, B_tile, H), jnp.float32)],
        compiler_params=pltpu.CompilerParams(
            dimension_semantics=("parallel",)),
        cost_estimate=pl.CostEstimate(
            flops=flops,
            transcendentals=L * T * B * H,
            bytes_accessed=bytes_accessed),
    )(*kernel_inputs)

    # Back to PyTorch layout: rows ordered (b, t) as in out.view(-1, H), and
    # strip the lane padding.  (Tiny layout plumbing only.)
    out = jnp.swapaxes(out_tb, 0, 1).reshape(B * T, O_pad)[:, :O]
    return out, hidden


def rnn_reference(x, h0, layer_params, fc_w, fc_b):
    """Pure-JAX reference matching torch.nn.RNN(batch_first=True) + Linear."""
    layer_in = x
    finals = []
    for l, (w_ih, w_hh, b_ih, b_hh) in enumerate(layer_params):
        h = h0[l]
        outs = []
        for t in range(layer_in.shape[1]):
            h = jnp.tanh(layer_in[:, t, :] @ w_ih.T + b_ih + h @ w_hh.T + b_hh)
            outs.append(h)
        layer_in = jnp.stack(outs, axis=1)
        finals.append(h)
    H = layer_in.shape[-1]
    out = layer_in.reshape(-1, H) @ fc_w.T + fc_b
    return out, jnp.stack(finals, axis=0)


if __name__ == "__main__":
    # Small shapes consistent with the module.
    B, T = 2, 8
    input_size, hidden_dim, output_size, n_layers = 16, 32, 10, 2

    key = jax.random.PRNGKey(0)
    keys = iter(jax.random.split(key, 32))

    def uniform(shape, bound):
        return jax.random.uniform(next(keys), shape, jnp.float32, -bound, bound)

    k_rnn = 1.0 / np.sqrt(hidden_dim)
    layer_params = []
    for l in range(n_layers):
        in_l = input_size if l == 0 else hidden_dim
        w_ih = uniform((hidden_dim, in_l), k_rnn)
        w_hh = uniform((hidden_dim, hidden_dim), k_rnn)
        b_ih = uniform((hidden_dim,), k_rnn)
        b_hh = uniform((hidden_dim,), k_rnn)
        layer_params.append((w_ih, w_hh, b_ih, b_hh))

    k_fc = 1.0 / np.sqrt(hidden_dim)
    fc_w = uniform((output_size, hidden_dim), k_fc)
    fc_b = uniform((output_size,), k_fc)

    x = jax.random.normal(next(keys), (B, T, input_size), jnp.float32)
    h0 = jnp.zeros((n_layers, B, hidden_dim), jnp.float32)  # init_hidden

    out, hidden = rnn_forward(x, h0, layer_params, fc_w, fc_b)
    jax.block_until_ready((out, hidden))

    out_ref, hidden_ref = rnn_reference(x, h0, layer_params, fc_w, fc_b)
    np.testing.assert_allclose(np.asarray(out), np.asarray(out_ref),
                               rtol=1e-5, atol=1e-5)
    np.testing.assert_allclose(np.asarray(hidden), np.asarray(hidden_ref),
                               rtol=1e-5, atol=1e-5)
    print("KERNEL_OK")
</pallas_src>

<mosaic_0001>
module attributes {stable_mosaic.version = 11 : i64} {
  func.func @kernel(%arg0: i32, %arg1: memref<8x2x16xf32, #tpu.memory_space<vmem>>, %arg2: memref<2x2x32xf32, #tpu.memory_space<vmem>>, %arg3: memref<16x32xf32, #tpu.memory_space<vmem>>, %arg4: memref<32x32xf32, #tpu.memory_space<vmem>>, %arg5: memref<1x32xf32, #tpu.memory_space<vmem>>, %arg6: memref<32x32xf32, #tpu.memory_space<vmem>>, %arg7: memref<32x32xf32, #tpu.memory_space<vmem>>, %arg8: memref<1x32xf32, #tpu.memory_space<vmem>>, %arg9: memref<32x128xf32, #tpu.memory_space<vmem>>, %arg10: memref<1x128xf32, #tpu.memory_space<vmem>>, %arg11: memref<8x2x128xf32, #tpu.memory_space<vmem>>, %arg12: memref<2x2x32xf32, #tpu.memory_space<vmem>>, %arg13: memref<8x2x32xf32, #tpu.memory_space<vmem>>) attributes {dimension_semantics = [#tpu.dimension_semantics<parallel>], iteration_bounds = array<i64: 1>, scalar_prefetch = 0 : i64, scratch_operands = 1 : i64, tpu.core_type = #tpu.core_type<tc>, window_params = [{transform_indices = @transform_0, window_bounds = array<i64: 8, 2, 16>}, {transform_indices = @transform_1, window_bounds = array<i64: 2, 2, 32>}, {pipeline_mode = #tpu.pipeline_mode<synchronous>, transform_indices = @transform_2, window_bounds = array<i64: 16, 32>}, {pipeline_mode = #tpu.pipeline_mode<synchronous>, transform_indices = @transform_3, window_bounds = array<i64: 32, 32>}, {pipeline_mode = #tpu.pipeline_mode<synchronous>, transform_indices = @transform_4, window_bounds = array<i64: 1, 32>}, {pipeline_mode = #tpu.pipeline_mode<synchronous>, transform_indices = @transform_5, window_bounds = array<i64: 32, 32>}, {pipeline_mode = #tpu.pipeline_mode<synchronous>, transform_indices = @transform_6, window_bounds = array<i64: 32, 32>}, {pipeline_mode = #tpu.pipeline_mode<synchronous>, transform_indices = @transform_7, window_bounds = array<i64: 1, 32>}, {pipeline_mode = #tpu.pipeline_mode<synchronous>, transform_indices = @transform_8, window_bounds = array<i64: 32, 128>}, {pipeline_mode = #tpu.pipeline_mode<synchronous>, transform_indices = @transform_9, window_bounds = array<i64: 1, 128>}, {transform_indices = @transform_10, window_bounds = array<i64: 8, 2, 128>}, {transform_indices = @transform_11, window_bounds = array<i64: 2, 2, 32>}]} {
    %c0 = arith.constant 0 : index
    %c0_0 = arith.constant 0 : index
    %0 = vector.load %arg3[%c0, %c0_0] : memref<16x32xf32, #tpu.memory_space<vmem>>, vector<16x32xf32>
    %c0_1 = arith.constant 0 : index
    %c0_2 = arith.constant 0 : index
    %1 = vector.load %arg4[%c0_1, %c0_2] : memref<32x32xf32, #tpu.memory_space<vmem>>, vector<32x32xf32>
    %c0_3 = arith.constant 0 : index
    %c0_4 = arith.constant 0 : index
    %2 = vector.load %arg5[%c0_3, %c0_4] : memref<1x32xf32, #tpu.memory_space<vmem>>, vector<1x32xf32>
    %c0_5 = arith.constant 0 : index
    %c0_6 = arith.constant 0 : index
    %c0_7 = arith.constant 0 : index
    %3 = vector.load %arg1[%c0_5, %c0_6, %c0_7] : memref<8x2x16xf32, #tpu.memory_space<vmem>>, vector<8x2x16xf32>
    %4 = vector.shape_cast %3 : vector<8x2x16xf32> to vector<16x16xf32>
    %cst = arith.constant dense<0.000000e+00> : vector<16x32xf32>
    %5 = tpu.matmul %4, %0, %cst {dimension_numbers = #tpu.dot_dimension_numbers<[1], [0], [0], [1], [0, 0, 1, 1], [], []>} : vector<16x16xf32>, vector<16x32xf32>, vector<16x32xf32> -> vector<16x32xf32>
    %6 = vector.broadcast %2 : vector<1x32xf32> to vector<16x32xf32>
    %7 = arith.addf %5, %6 : vector<16x32xf32>
    %8 = vector.shape_cast %7 : vector<16x32xf32> to vector<8x2x32xf32>
    %c0_8 = arith.constant 0 : index
    %c0_9 = arith.constant 0 : index
    %c0_10 = arith.constant 0 : index
    %9 = vector.load %arg13[%c0_8, %c0_9, %c0_10] : memref<8x2x32xf32, #tpu.memory_space<vmem>>, vector<8x2x32xf32>
    tpu.vector_store %arg13[%c0_8, %c0_9, %c0_10], %8 {strides = array<i32>} : memref<8x2x32xf32, #tpu.memory_space<vmem>>, vector<8x2x32xf32>,
    %c0_11 = arith.constant 0 : index
    %c0_12 = arith.constant 0 : index
    %c0_13 = arith.constant 0 : index
    %10 = vector.load %arg2[%c0_11, %c0_12, %c0_13] : memref<2x2x32xf32, #tpu.memory_space<vmem>>, vector<1x2x32xf32>
    %11 = vector.shape_cast %10 : vector<1x2x32xf32> to vector<2x32xf32>
    %c0_i32 = arith.constant 0 : i32
    %12 = arith.index_cast %c0_i32 : i32 to index
    %c0_14 = arith.constant 0 : index
    %c0_15 = arith.constant 0 : index
    %13 = vector.load %arg13[%12, %c0_14, %c0_15] : memref<8x2x32xf32, #tpu.memory_space<vmem>>, vector<1x2x32xf32>
    %14 = vector.shape_cast %13 : vector<1x2x32xf32> to vector<2x32xf32>
    %cst_16 = arith.constant dense<0.000000e+00> : vector<2x32xf32>
    %15 = tpu.matmul %11, %1, %cst_16 {dimension_numbers = #tpu.dot_dimension_numbers<[1], [0], [0], [1], [0, 0, 1, 1], [], []>} : vector<2x32xf32>, vector<32x32xf32>, vector<2x32xf32> -> vector<2x32xf32>
    %16 = arith.addf %14, %15 : vector<2x32xf32>
    %17 = math.tanh %16 : vector<2x32xf32>
    %18 = arith.index_cast %c0_i32 : i32 to index
    %c0_17 = arith.constant 0 : index
    %c0_18 = arith.constant 0 : index
    %19 = vector.load %arg13[%18, %c0_17, %c0_18] : memref<8x2x32xf32, #tpu.memory_space<vmem>>, vector<1x2x32xf32>
    %20 = vector.shape_cast %19 : vector<1x2x32xf32> to vector<2x32xf32>
    %21 = vector.shape_cast %17 : vector<2x32xf32> to vector<1x2x32xf32>
    tpu.vector_store %arg13[%18, %c0_17, %c0_18], %21 {strides = array<i32>} : memref<8x2x32xf32, #tpu.memory_space<vmem>>, vector<1x2x32xf32>,
    %c1_i32 = arith.constant 1 : i32
    %22 = arith.index_cast %c1_i32 : i32 to index
    %c0_19 = arith.constant 0 : index
    %c0_20 = arith.constant 0 : index
    %23 = vector.load %arg13[%22, %c0_19, %c0_20] : memref<8x2x32xf32, #tpu.memory_space<vmem>>, vector<1x2x32xf32>
    %24 = vector.shape_cast %23 : vector<1x2x32xf32> to vector<2x32xf32>
    %cst_21 = arith.constant dense<0.000000e+00> : vector<2x32xf32>
    %25 = tpu.matmul %17, %1, %cst_21 {dimension_numbers = #tpu.dot_dimension_numbers<[1], [0], [0], [1], [0, 0, 1, 1], [], []>} : vector<2x32xf32>, vector<32x32xf32>, vector<2x32xf32> -> vector<2x32xf32>
    %26 = arith.addf %24, %25 : vector<2x32xf32>
    %27 = math.tanh %26 : vector<2x32xf32>
    %28 = arith.index_cast %c1_i32 : i32 to index
    %c0_22 = arith.constant 0 : index
    %c0_23 = arith.constant 0 : index
    %29 = vector.load %arg13[%28, %c0_22, %c0_23] : memref<8x2x32xf32, #tpu.memory_space<vmem>>, vector<1x2x32xf32>
    %30 = vector.shape_cast %29 : vector<1x2x32xf32> to vector<2x32xf32>
    %31 = vector.shape_cast %27 : vector<2x32xf32> to vector<1x2x32xf32>
    tpu.vector_store %arg13[%28, %c0_22, %c0_23], %31 {strides = array<i32>} : memref<8x2x32xf32, #tpu.memory_space<vmem>>, vector<1x2x32xf32>,
    %c2_i32 = arith.constant 2 : i32
    %32 = arith.index_cast %c2_i32 : i32 to index
    %c0_24 = arith.constant 0 : index
    %c0_25 = arith.constant 0 : index
    %33 = vector.load %arg13[%32, %c0_24, %c0_25] : memref<8x2x32xf32, #tpu.memory_space<vmem>>, vector<1x2x32xf32>
    %34 = vector.shape_cast %33 : vector<1x2x32xf32> to vector<2x32xf32>
    %cst_26 = arith.constant dense<0.000000e+00> : vector<2x32xf32>
    %35 = tpu.matmul %27, %1, %cst_26 {dimension_numbers = #tpu.dot_dimension_numbers<[1], [0], [0], [1], [0, 0, 1, 1], [], []>} : vector<2x32xf32>, vector<32x32xf32>, vector<2x32xf32> -> vector<2x32xf32>
    %36 = arith.addf %34, %35 : vector<2x32xf32>
    %37 = math.tanh %36 : vector<2x32xf32>
    %38 = arith.index_cast %c2_i32 : i32 to index
    %c0_27 = arith.constant 0 : index
    %c0_28 = arith.constant 0 : index
    %39 = vector.load %arg13[%38, %c0_27, %c0_28] : memref<8x2x32xf32, #tpu.memory_space<vmem>>, vector<1x2x32xf32>
    %40 = vector.shape_cast %39 : vector<1x2x32xf32> to vector<2x32xf32>
    %41 = vector.shape_cast %37 : vector<2x32xf32> to vector<1x2x32xf32>
    tpu.vector_store %arg13[%38, %c0_27, %c0_28], %41 {strides = array<i32>} : memref<8x2x32xf32, #tpu.memory_space<vmem>>, vector<1x2x32xf32>,
    %c3_i32 = arith.constant 3 : i32
    %42 = arith.index_cast %c3_i32 : i32 to index
    %c0_29 = arith.constant 0 : index
    %c0_30 = arith.constant 0 : index
    %43 = vector.load %arg13[%42, %c0_29, %c0_30] : memref<8x2x32xf32, #tpu.memory_space<vmem>>, vector<1x2x32xf32>
    %44 = vector.shape_cast %43 : vector<1x2x32xf32> to vector<2x32xf32>
    %cst_31 = arith.constant dense<0.000000e+00> : vector<2x32xf32>
    %45 = tpu.matmul %37, %1, %cst_31 {dimension_numbers = #tpu.dot_dimension_numbers<[1], [0], [0], [1], [0, 0, 1, 1], [], []>} : vector<2x32xf32>, vector<32x32xf32>, vector<2x32xf32> -> vector<2x32xf32>
    %46 = arith.addf %44, %45 : vector<2x32xf32>
    %47 = math.tanh %46 : vector<2x32xf32>
    %48 = arith.index_cast %c3_i32 : i32 to index
    %c0_32 = arith.constant 0 : index
    %c0_33 = arith.constant 0 : index
    %49 = vector.load %arg13[%48, %c0_32, %c0_33] : memref<8x2x32xf32, #tpu.memory_space<vmem>>, vector<1x2x32xf32>
    %50 = vector.shape_cast %49 : vector<1x2x32xf32> to vector<2x32xf32>
    %51 = vector.shape_cast %47 : vector<2x32xf32> to vector<1x2x32xf32>
    tpu.vector_store %arg13[%48, %c0_32, %c0_33], %51 {strides = array<i32>} : memref<8x2x32xf32, #tpu.memory_space<vmem>>, vector<1x2x32xf32>,
    %c4_i32 = arith.constant 4 : i32
    %52 = arith.index_cast %c4_i32 : i32 to index
    %c0_34 = arith.constant 0 : index
    %c0_35 = arith.constant 0 : index
    %53 = vector.load %arg13[%52, %c0_34, %c0_35] : memref<8x2x32xf32, #tpu.memory_space<vmem>>, vector<1x2x32xf32>
    %54 = vector.shape_cast %53 : vector<1x2x32xf32> to vector<2x32xf32>
    %cst_36 = arith.constant dense<0.000000e+00> : vector<2x32xf32>
    %55 = tpu.matmul %47, %1, %cst_36 {dimension_numbers = #tpu.dot_dimension_numbers<[1], [0], [0], [1], [0, 0, 1, 1], [], []>} : vector<2x32xf32>, vector<32x32xf32>, vector<2x32xf32> -> vector<2x32xf32>
    %56 = arith.addf %54, %55 : vector<2x32xf32>
    %57 = math.tanh %56 : vector<2x32xf32>
    %58 = arith.index_cast %c4_i32 : i32 to index
    %c0_37 = arith.constant 0 : index
    %c0_38 = arith.constant 0 : index
    %59 = vector.load %arg13[%58, %c0_37, %c0_38] : memref<8x2x32xf32, #tpu.memory_space<vmem>>, vector<1x2x32xf32>
    %60 = vector.shape_cast %59 : vector<1x2x32xf32> to vector<2x32xf32>
    %61 = vector.shape_cast %57 : vector<2x32xf32> to vector<1x2x32xf32>
    tpu.vector_store %arg13[%58, %c0_37, %c0_38], %61 {strides = array<i32>} : memref<8x2x32xf32, #tpu.memory_space<vmem>>, vector<1x2x32xf32>,
    %c5_i32 = arith.constant 5 : i32
    %62 = arith.index_cast %c5_i32 : i32 to index
    %c0_39 = arith.constant 0 : index
    %c0_40 = arith.constant 0 : index
    %63 = vector.load %arg13[%62, %c0_39, %c0_40] : memref<8x2x32xf32, #tpu.memory_space<vmem>>, vector<1x2x32xf32>
    %64 = vector.shape_cast %63 : vector<1x2x32xf32> to vector<2x32xf32>
    %cst_41 = arith.constant dense<0.000000e+00> : vector<2x32xf32>
    %65 = tpu.matmul %57, %1, %cst_41 {dimension_numbers = #tpu.dot_dimension_numbers<[1], [0], [0], [1], [0, 0, 1, 1], [], []>} : vector<2x32xf32>, vector<32x32xf32>, vector<2x32xf32> -> vector<2x32xf32>
    %66 = arith.addf %64, %65 : vector<2x32xf32>
    %67 = math.tanh %66 : vector<2x32xf32>
    %68 = arith.index_cast %c5_i32 : i32 to index
    %c0_42 = arith.constant 0 : index
    %c0_43 = arith.constant 0 : index
    %69 = vector.load %arg13[%68, %c0_42, %c0_43] : memref<8x2x32xf32, #tpu.memory_space<vmem>>, vector<1x2x32xf32>
    %70 = vector.shape_cast %69 : vector<1x2x32xf32> to vector<2x32xf32>
    %71 = vector.shape_cast %67 : vector<2x32xf32> to vector<1x2x32xf32>
    tpu.vector_store %arg13[%68, %c0_42, %c0_43], %71 {strides = array<i32>} : memref<8x2x32xf32, #tpu.memory_space<vmem>>, vector<1x2x32xf32>,
    %c6_i32 = arith.constant 6 : i32
    %72 = arith.index_cast %c6_i32 : i32 to index
    %c0_44 = arith.constant 0 : index
    %c0_45 = arith.constant 0 : index
    %73 = vector.load %arg13[%72, %c0_44, %c0_45] : memref<8x2x32xf32, #tpu.memory_space<vmem>>, vector<1x2x32xf32>
    %74 = vector.shape_cast %73 : vector<1x2x32xf32> to vector<2x32xf32>
    %cst_46 = arith.constant dense<0.000000e+00> : vector<2x32xf32>
    %75 = tpu.matmul %67, %1, %cst_46 {dimension_numbers = #tpu.dot_dimension_numbers<[1], [0], [0], [1], [0, 0, 1, 1], [], []>} : vector<2x32xf32>, vector<32x32xf32>, vector<2x32xf32> -> vector<2x32xf32>
    %76 = arith.addf %74, %75 : vector<2x32xf32>
    %77 = math.tanh %76 : vector<2x32xf32>
    %78 = arith.index_cast %c6_i32 : i32 to index
    %c0_47 = arith.constant 0 : index
    %c0_48 = arith.constant 0 : index
    %79 = vector.load %arg13[%78, %c0_47, %c0_48] : memref<8x2x32xf32, #tpu.memory_space<vmem>>, vector<1x2x32xf32>
    %80 = vector.shape_cast %79 : vector<1x2x32xf32> to vector<2x32xf32>
    %81 = vector.shape_cast %77 : vector<2x32xf32> to vector<1x2x32xf32>
    tpu.vector_store %arg13[%78, %c0_47, %c0_48], %81 {strides = array<i32>} : memref<8x2x32xf32, #tpu.memory_space<vmem>>, vector<1x2x32xf32>,
    %c7_i32 = arith.constant 7 : i32
    %82 = arith.index_cast %c7_i32 : i32 to index
    %c0_49 = arith.constant 0 : index
    %c0_50 = arith.constant 0 : index
    %83 = vector.load %arg13[%82, %c0_49, %c0_50] : memref<8x2x32xf32, #tpu.memory_space<vmem>>, vector<1x2x32xf32>
    %84 = vector.shape_cast %83 : vector<1x2x32xf32> to vector<2x32xf32>
    %cst_51 = arith.constant dense<0.000000e+00> : vector<2x32xf32>
    %85 = tpu.matmul %77, %1, %cst_51 {dimension_numbers = #tpu.dot_dimension_numbers<[1], [0], [0], [1], [0, 0, 1, 1], [], []>} : vector<2x32xf32>, vector<32x32xf32>, vector<2x32xf32> -> vector<2x32xf32>
    %86 = arith.addf %84, %85 : vector<2x32xf32>
    %87 = math.tanh %86 : vector<2x32xf32>
    %88 = arith.index_cast %c7_i32 : i32 to index
    %c0_52 = arith.constant 0 : index
    %c0_53 = arith.constant 0 : index
    %89 = vector.load %arg13[%88, %c0_52, %c0_53] : memref<8x2x32xf32, #tpu.memory_space<vmem>>, vector<1x2x32xf32>
    %90 = vector.shape_cast %89 : vector<1x2x32xf32> to vector<2x32xf32>
    %91 = vector.shape_cast %87 : vector<2x32xf32> to vector<1x2x32xf32>
    tpu.vector_store %arg13[%88, %c0_52, %c0_53], %91 {strides = array<i32>} : memref<8x2x32xf32, #tpu.memory_space<vmem>>, vector<1x2x32xf32>,
    %c8_i32 = arith.constant 8 : i32
    %c0_54 = arith.constant 0 : index
    %c0_55 = arith.constant 0 : index
    %c0_56 = arith.constant 0 : index
    %92 = vector.load %arg12[%c0_54, %c0_55, %c0_56] : memref<2x2x32xf32, #tpu.memory_space<vmem>>, vector<1x2x32xf32>
    %93 = vector.shape_cast %92 : vector<1x2x32xf32> to vector<2x32xf32>
    %94 = vector.shape_cast %87 : vector<2x32xf32> to vector<1x2x32xf32>
    tpu.vector_store %arg12[%c0_54, %c0_55, %c0_56], %94 {strides = array<i32>} : memref<2x2x32xf32, #tpu.memory_space<vmem>>, vector<1x2x32xf32>,
    %c0_57 = arith.constant 0 : index
    %c0_58 = arith.constant 0 : index
    %95 = vector.load %arg6[%c0_57, %c0_58] : memref<32x32xf32, #tpu.memory_space<vmem>>, vector<32x32xf32>
    %c0_59 = arith.constant 0 : index
    %c0_60 = arith.constant 0 : index
    %96 = vector.load %arg7[%c0_59, %c0_60] : memref<32x32xf32, #tpu.memory_space<vmem>>, vector<32x32xf32>
    %c0_61 = arith.constant 0 : index
    %c0_62 = arith.constant 0 : index
    %97 = vector.load %arg8[%c0_61, %c0_62] : memref<1x32xf32, #tpu.memory_space<vmem>>, vector<1x32xf32>
    %c0_63 = arith.constant 0 : index
    %c0_64 = arith.constant 0 : index
    %c0_65 = arith.constant 0 : index
    %98 = vector.load %arg13[%c0_63, %c0_64, %c0_65] : memref<8x2x32xf32, #tpu.memory_space<vmem>>, vector<8x2x32xf32>
    %99 = vector.shape_cast %98 : vector<8x2x32xf32> to vector<16x32xf32>
    %cst_66 = arith.constant dense<0.000000e+00> : vector<16x32xf32>
    %100 = tpu.matmul %99, %95, %cst_66 {dimension_numbers = #tpu.dot_dimension_numbers<[1], [0], [0], [1], [0, 0, 1, 1], [], []>} : vector<16x32xf32>, vector<32x32xf32>, vector<16x32xf32> -> vector<16x32xf32>
    %101 = vector.broadcast %97 : vector<1x32xf32> to vector<16x32xf32>
    %102 = arith.addf %100, %101 : vector<16x32xf32>
    %103 = vector.shape_cast %102 : vector<16x32xf32> to vector<8x2x32xf32>
    %c0_67 = arith.constant 0 : index
    %c0_68 = arith.constant 0 : index
    %c0_69 = arith.constant 0 : index
    %104 = vector.load %arg13[%c0_67, %c0_68, %c0_69] : memref<8x2x32xf32, #tpu.memory_space<vmem>>, vector<8x2x32xf32>
    tpu.vector_store %arg13[%c0_67, %c0_68, %c0_69], %103 {strides = array<i32>} : memref<8x2x32xf32, #tpu.memory_space<vmem>>, vector<8x2x32xf32>,
    %c1 = arith.constant 1 : index
    %c0_70 = arith.constant 0 : index
    %c0_71 = arith.constant 0 : index
    %105 = vector.load %arg2[%c1, %c0_70, %c0_71] : memref<2x2x32xf32, #tpu.memory_space<vmem>>, vector<1x2x32xf32>
    %106 = vector.shape_cast %105 : vector<1x2x32xf32> to vector<2x32xf32>
    %c0_i32_72 = arith.constant 0 : i32
    %107 = arith.index_cast %c0_i32_72 : i32 to index
    %c0_73 = arith.constant 0 : index
    %c0_74 = arith.constant 0 : index
    %108 = vector.load %arg13[%107, %c0_73, %c0_74] : memref<8x2x32xf32, #tpu.memory_space<vmem>>, vector<1x2x32xf32>
    %109 = vector.shape_cast %108 : vector<1x2x32xf32> to vector<2x32xf32>
    %cst_75 = arith.constant dense<0.000000e+00> : vector<2x32xf32>
    %110 = tpu.matmul %106, %96, %cst_75 {dimension_numbers = #tpu.dot_dimension_numbers<[1], [0], [0], [1], [0, 0, 1, 1], [], []>} : vector<2x32xf32>, vector<32x32xf32>, vector<2x32xf32> -> vector<2x32xf32>
    %111 = arith.addf %109, %110 : vector<2x32xf32>
    %112 = math.tanh %111 : vector<2x32xf32>
    %113 = arith.index_cast %c0_i32_72 : i32 to index
    %c0_76 = arith.constant 0 : index
    %c0_77 = arith.constant 0 : index
    %114 = vector.load %arg13[%113, %c0_76, %c0_77] : memref<8x2x32xf32, #tpu.memory_space<vmem>>, vector<1x2x32xf32>
    %115 = vector.shape_cast %114 : vector<1x2x32xf32> to vector<2x32xf32>
    %116 = vector.shape_cast %112 : vector<2x32xf32> to vector<1x2x32xf32>
    tpu.vector_store %arg13[%113, %c0_76, %c0_77], %116 {strides = array<i32>} : memref<8x2x32xf32, #tpu.memory_space<vmem>>, vector<1x2x32xf32>,
    %c1_i32_78 = arith.constant 1 : i32
    %117 = arith.index_cast %c1_i32_78 : i32 to index
    %c0_79 = arith.constant 0 : index
    %c0_80 = arith.constant 0 : index
    %118 = vector.load %arg13[%117, %c0_79, %c0_80] : memref<8x2x32xf32, #tpu.memory_space<vmem>>, vector<1x2x32xf32>
    %119 = vector.shape_cast %118 : vector<1x2x32xf32> to vector<2x32xf32>
    %cst_81 = arith.constant dense<0.000000e+00> : vector<2x32xf32>
    %120 = tpu.matmul %112, %96, %cst_81 {dimension_numbers = #tpu.dot_dimension_numbers<[1], [0], [0], [1], [0, 0, 1, 1], [], []>} : vector<2x32xf32>, vector<32x32xf32>, vector<2x32xf32> -> vector<2x32xf32>
    %121 = arith.addf %119, %120 : vector<2x32xf32>
    %122 = math.tanh %121 : vector<2x32xf32>
    %123 = arith.index_cast %c1_i32_78 : i32 to index
    %c0_82 = arith.constant 0 : index
    %c0_83 = arith.constant 0 : index
    %124 = vector.load %arg13[%123, %c0_82, %c0_83] : memref<8x2x32xf32, #tpu.memory_space<vmem>>, vector<1x2x32xf32>
    %125 = vector.shape_cast %124 : vector<1x2x32xf32> to vector<2x32xf32>
    %126 = vector.shape_cast %122 : vector<2x32xf32> to vector<1x2x32xf32>
    tpu.vector_store %arg13[%123, %c0_82, %c0_83], %126 {strides = array<i32>} : memref<8x2x32xf32, #tpu.memory_space<vmem>>, vector<1x2x32xf32>,
    %c2_i32_84 = arith.constant 2 : i32
    %127 = arith.index_cast %c2_i32_84 : i32 to index
    %c0_85 = arith.constant 0 : index
    %c0_86 = arith.constant 0 : index
    %128 = vector.load %arg13[%127, %c0_85, %c0_86] : memref<8x2x32xf32, #tpu.memory_space<vmem>>, vector<1x2x32xf32>
    %129 = vector.shape_cast %128 : vector<1x2x32xf32> to vector<2x32xf32>
    %cst_87 = arith.constant dense<0.000000e+00> : vector<2x32xf32>
    %130 = tpu.matmul %122, %96, %cst_87 {dimension_numbers = #tpu.dot_dimension_numbers<[1], [0], [0], [1], [0, 0, 1, 1], [], []>} : vector<2x32xf32>, vector<32x32xf32>, vector<2x32xf32> -> vector<2x32xf32>
    %131 = arith.addf %129, %130 : vector<2x32xf32>
    %132 = math.tanh %131 : vector<2x32xf32>
    %133 = arith.index_cast %c2_i32_84 : i32 to index
    %c0_88 = arith.constant 0 : index
    %c0_89 = arith.constant 0 : index
    %134 = vector.load %arg13[%133, %c0_88, %c0_89] : memref<8x2x32xf32, #tpu.memory_space<vmem>>, vector<1x2x32xf32>
    %135 = vector.shape_cast %134 : vector<1x2x32xf32> to vector<2x32xf32>
    %136 = vector.shape_cast %132 : vector<2x32xf32> to vector<1x2x32xf32>
    tpu.vector_store %arg13[%133, %c0_88, %c0_89], %136 {strides = array<i32>} : memref<8x2x32xf32, #tpu.memory_space<vmem>>, vector<1x2x32xf32>,
    %c3_i32_90 = arith.constant 3 : i32
    %137 = arith.index_cast %c3_i32_90 : i32 to index
    %c0_91 = arith.constant 0 : index
    %c0_92 = arith.constant 0 : index
    %138 = vector.load %arg13[%137, %c0_91, %c0_92] : memref<8x2x32xf32, #tpu.memory_space<vmem>>, vector<1x2x32xf32>
    %139 = vector.shape_cast %138 : vector<1x2x32xf32> to vector<2x32xf32>
    %cst_93 = arith.constant dense<0.000000e+00> : vector<2x32xf32>
    %140 = tpu.matmul %132, %96, %cst_93 {dimension_numbers = #tpu.dot_dimension_numbers<[1], [0], [0], [1], [0, 0, 1, 1], [], []>} : vector<2x32xf32>, vector<32x32xf32>, vector<2x32xf32> -> vector<2x32xf32>
    %141 = arith.addf %139, %140 : vector<2x32xf32>
    %142 = math.tanh %141 : vector<2x32xf32>
    %143 = arith.index_cast %c3_i32_90 : i32 to index
    %c0_94 = arith.constant 0 : index
    %c0_95 = arith.constant 0 : index
    %144 = vector.load %arg13[%143, %c0_94, %c0_95] : memref<8x2x32xf32, #tpu.memory_space<vmem>>, vector<1x2x32xf32>
    %145 = vector.shape_cast %144 : vector<1x2x32xf32> to vector<2x32xf32>
    %146 = vector.shape_cast %142 : vector<2x32xf32> to vector<1x2x32xf32>
    tpu.vector_store %arg13[%143, %c0_94, %c0_95], %146 {strides = array<i32>} : memref<8x2x32xf32, #tpu.memory_space<vmem>>, vector<1x2x32xf32>,
    %c4_i32_96 = arith.constant 4 : i32
    %147 = arith.index_cast %c4_i32_96 : i32 to index
    %c0_97 = arith.constant 0 : index
    %c0_98 = arith.constant 0 : index
    %148 = vector.load %arg13[%147, %c0_97, %c0_98] : memref<8x2x32xf32, #tpu.memory_space<vmem>>, vector<1x2x32xf32>
    %149 = vector.shape_cast %148 : vector<1x2x32xf32> to vector<2x32xf32>
    %cst_99 = arith.constant dense<0.000000e+00> : vector<2x32xf32>
    %150 = tpu.matmul %142, %96, %cst_99 {dimension_numbers = #tpu.dot_dimension_numbers<[1], [0], [0], [1], [0, 0, 1, 1], [], []>} : vector<2x32xf32>, vector<32x32xf32>, vector<2x32xf32> -> vector<2x32xf32>
    %151 = arith.addf %149, %150 : vector<2x32xf32>
    %152 = math.tanh %151 : vector<2x32xf32>
    %153 = arith.index_cast %c4_i32_96 : i32 to index
    %c0_100 = arith.constant 0 : index
    %c0_101 = arith.constant 0 : index
    %154 = vector.load %arg13[%153, %c0_100, %c0_101] : memref<8x2x32xf32, #tpu.memory_space<vmem>>, vector<1x2x32xf32>
    %155 = vector.shape_cast %154 : vector<1x2x32xf32> to vector<2x32xf32>
    %156 = vector.shape_cast %152 : vector<2x32xf32> to vector<1x2x32xf32>
    tpu.vector_store %arg13[%153, %c0_100, %c0_101], %156 {strides = array<i32>} : memref<8x2x32xf32, #tpu.memory_space<vmem>>, vector<1x2x32xf32>,
    %c5_i32_102 = arith.constant 5 : i32
    %157 = arith.index_cast %c5_i32_102 : i32 to index
    %c0_103 = arith.constant 0 : index
    %c0_104 = arith.constant 0 : index
    %158 = vector.load %arg13[%157, %c0_103, %c0_104] : memref<8x2x32xf32, #tpu.memory_space<vmem>>, vector<1x2x32xf32>
    %159 = vector.shape_cast %158 : vector<1x2x32xf32> to vector<2x32xf32>
    %cst_105 = arith.constant dense<0.000000e+00> : vector<2x32xf32>
    %160 = tpu.matmul %152, %96, %cst_105 {dimension_numbers = #tpu.dot_dimension_numbers<[1], [0], [0], [1], [0, 0, 1, 1], [], []>} : vector<2x32xf32>, vector<32x32xf32>, vector<2x32xf32> -> vector<2x32xf32>
    %161 = arith.addf %159, %160 : vector<2x32xf32>
    %162 = math.tanh %161 : vector<2x32xf32>
    %163 = arith.index_cast %c5_i32_102 : i32 to index
    %c0_106 = arith.constant 0 : index
    %c0_107 = arith.constant 0 : index
    %164 = vector.load %arg13[%163, %c0_106, %c0_107] : memref<8x2x32xf32, #tpu.memory_space<vmem>>, vector<1x2x32xf32>
    %165 = vector.shape_cast %164 : vector<1x2x32xf32> to vector<2x32xf32>
    %166 = vector.shape_cast %162 : vector<2x32xf32> to vector<1x2x32xf32>
    tpu.vector_store %arg13[%163, %c0_106, %c0_107], %166 {strides = array<i32>} : memref<8x2x32xf32, #tpu.memory_space<vmem>>, vector<1x2x32xf32>,
    %c6_i32_108 = arith.constant 6 : i32
    %167 = arith.index_cast %c6_i32_108 : i32 to index
    %c0_109 = arith.constant 0 : index
    %c0_110 = arith.constant 0 : index
    %168 = vector.load %arg13[%167, %c0_109, %c0_110] : memref<8x2x32xf32, #tpu.memory_space<vmem>>, vector<1x2x32xf32>
    %169 = vector.shape_cast %168 : vector<1x2x32xf32> to vector<2x32xf32>
    %cst_111 = arith.constant dense<0.000000e+00> : vector<2x32xf32>
    %170 = tpu.matmul %162, %96, %cst_111 {dimension_numbers = #tpu.dot_dimension_numbers<[1], [0], [0], [1], [0, 0, 1, 1], [], []>} : vector<2x32xf32>, vector<32x32xf32>, vector<2x32xf32> -> vector<2x32xf32>
    %171 = arith.addf %169, %170 : vector<2x32xf32>
    %172 = math.tanh %171 : vector<2x32xf32>
    %173 = arith.index_cast %c6_i32_108 : i32 to index
    %c0_112 = arith.constant 0 : index
    %c0_113 = arith.constant 0 : index
    %174 = vector.load %arg13[%173, %c0_112, %c0_113] : memref<8x2x32xf32, #tpu.memory_space<vmem>>, vector<1x2x32xf32>
    %175 = vector.shape_cast %174 : vector<1x2x32xf32> to vector<2x32xf32>
    %176 = vector.shape_cast %172 : vector<2x32xf32> to vector<1x2x32xf32>
    tpu.vector_store %arg13[%173, %c0_112, %c0_113], %176 {strides = array<i32>} : memref<8x2x32xf32, #tpu.memory_space<vmem>>, vector<1x2x32xf32>,
    %c7_i32_114 = arith.constant 7 : i32
    %177 = arith.index_cast %c7_i32_114 : i32 to index
    %c0_115 = arith.constant 0 : index
    %c0_116 = arith.constant 0 : index
    %178 = vector.load %arg13[%177, %c0_115, %c0_116] : memref<8x2x32xf32, #tpu.memory_space<vmem>>, vector<1x2x32xf32>
    %179 = vector.shape_cast %178 : vector<1x2x32xf32> to vector<2x32xf32>
    %cst_117 = arith.constant dense<0.000000e+00> : vector<2x32xf32>
    %180 = tpu.matmul %172, %96, %cst_117 {dimension_numbers = #tpu.dot_dimension_numbers<[1], [0], [0], [1], [0, 0, 1, 1], [], []>} : vector<2x32xf32>, vector<32x32xf32>, vector<2x32xf32> -> vector<2x32xf32>
    %181 = arith.addf %179, %180 : vector<2x32xf32>
    %182 = math.tanh %181 : vector<2x32xf32>
    %183 = arith.index_cast %c7_i32_114 : i32 to index
    %c0_118 = arith.constant 0 : index
    %c0_119 = arith.constant 0 : index
    %184 = vector.load %arg13[%183, %c0_118, %c0_119] : memref<8x2x32xf32, #tpu.memory_space<vmem>>, vector<1x2x32xf32>
    %185 = vector.shape_cast %184 : vector<1x2x32xf32> to vector<2x32xf32>
    %186 = vector.shape_cast %182 : vector<2x32xf32> to vector<1x2x32xf32>
    tpu.vector_store %arg13[%183, %c0_118, %c0_119], %186 {strides = array<i32>} : memref<8x2x32xf32, #tpu.memory_space<vmem>>, vector<1x2x32xf32>,
    %c8_i32_120 = arith.constant 8 : i32
    %c1_121 = arith.constant 1 : index
    %c0_122 = arith.constant 0 : index
    %c0_123 = arith.constant 0 : index
    %187 = vector.load %arg12[%c1_121, %c0_122, %c0_123] : memref<2x2x32xf32, #tpu.memory_space<vmem>>, vector<1x2x32xf32>
    %188 = vector.shape_cast %187 : vector<1x2x32xf32> to vector<2x32xf32>
    %189 = vector.shape_cast %182 : vector<2x32xf32> to vector<1x2x32xf32>
    tpu.vector_store %arg12[%c1_121, %c0_122, %c0_123], %189 {strides = array<i32>} : memref<2x2x32xf32, #tpu.memory_space<vmem>>, vector<1x2x32xf32>,
    %c0_124 = arith.constant 0 : index
    %c0_125 = arith.constant 0 : index
    %c0_126 = arith.constant 0 : index
    %190 = vector.load %arg13[%c0_124, %c0_125, %c0_126] : memref<8x2x32xf32, #tpu.memory_space<vmem>>, vector<8x2x32xf32>
    %191 = vector.shape_cast %190 : vector<8x2x32xf32> to vector<16x32xf32>
    %c0_127 = arith.constant 0 : index
    %c0_128 = arith.constant 0 : index
    %192 = vector.load %arg9[%c0_127, %c0_128] : memref<32x128xf32, #tpu.memory_space<vmem>>, vector<32x128xf32>
    %cst_129 = arith.constant dense<0.000000e+00> : vector<16x128xf32>
    %193 = tpu.matmul %191, %192, %cst_129 {dimension_numbers = #tpu.dot_dimension_numbers<[1], [0], [0], [1], [0, 0, 1, 1], [], []>} : vector<16x32xf32>, vector<32x128xf32>, vector<16x128xf32> -> vector<16x128xf32>
    %c0_130 = arith.constant 0 : index
    %c0_131 = arith.constant 0 : index
    %194 = vector.load %arg10[%c0_130, %c0_131] : memref<1x128xf32, #tpu.memory_space<vmem>>, vector<1x128xf32>
    %195 = vector.broadcast %194 : vector<1x128xf32> to vector<16x128xf32>
    %196 = arith.addf %193, %195 : vector<16x128xf32>
    %197 = vector.shape_cast %196 : vector<16x128xf32> to vector<8x2x128xf32>
    %c0_132 = arith.constant 0 : index
    %c0_133 = arith.constant 0 : index
    %c0_134 = arith.constant 0 : index
    %198 = vector.load %arg11[%c0_132, %c0_133, %c0_134] : memref<8x2x128xf32, #tpu.memory_space<vmem>>, vector<8x2x128xf32>
    tpu.vector_store %arg11[%c0_132, %c0_133, %c0_134], %197 {strides = array<i32>} : memref<8x2x128xf32, #tpu.memory_space<vmem>>, vector<8x2x128xf32>,
    return
  }
  func.func @transform_0(%arg0: i32) -> (i32, i32, i32) {
    %c0_i32 = arith.constant 0 : i32
    %c0_i32_0 = arith.constant 0 : i32
    %c0_i32_1 = arith.constant 0 : i32
    return %c0_i32, %arg0, %c0_i32_0 : i32, i32, i32
  }
  func.func @transform_1(%arg0: i32) -> (i32, i32, i32) {
    %c0_i32 = arith.constant 0 : i32
    %c0_i32_0 = arith.constant 0 : i32
    %c0_i32_1 = arith.constant 0 : i32
    return %c0_i32, %arg0, %c0_i32_0 : i32, i32, i32
  }
  func.func @transform_2(%arg0: i32) -> (i32, i32) {
    %c0_i32 = arith.constant 0 : i32
    %c0_i32_0 = arith.constant 0 : i32
    %c0_i32_1 = arith.constant 0 : i32
    return %c0_i32, %c0_i32_0 : i32, i32
  }
  func.func @transform_3(%arg0: i32) -> (i32, i32) {
    %c0_i32 = arith.constant 0 : i32
    %c0_i32_0 = arith.constant 0 : i32
    %c0_i32_1 = arith.constant 0 : i32
    return %c0_i32, %c0_i32_0 : i32, i32
  }
  func.func @transform_4(%arg0: i32) -> (i32, i32) {
    %c0_i32 = arith.constant 0 : i32
    %c0_i32_0 = arith.constant 0 : i32
    %c0_i32_1 = arith.constant 0 : i32
    return %c0_i32, %c0_i32_0 : i32, i32
  }
  func.func @transform_5(%arg0: i32) -> (i32, i32) {
    %c0_i32 = arith.constant 0 : i32
    %c0_i32_0 = arith.constant 0 : i32
    %c0_i32_1 = arith.constant 0 : i32
    return %c0_i32, %c0_i32_0 : i32, i32
  }
  func.func @transform_6(%arg0: i32) -> (i32, i32) {
    %c0_i32 = arith.constant 0 : i32
    %c0_i32_0 = arith.constant 0 : i32
    %c0_i32_1 = arith.constant 0 : i32
    return %c0_i32, %c0_i32_0 : i32, i32
  }
  func.func @transform_7(%arg0: i32) -> (i32, i32) {
    %c0_i32 = arith.constant 0 : i32
    %c0_i32_0 = arith.constant 0 : i32
    %c0_i32_1 = arith.constant 0 : i32
    return %c0_i32, %c0_i32_0 : i32, i32
  }
  func.func @transform_8(%arg0: i32) -> (i32, i32) {
    %c0_i32 = arith.constant 0 : i32
    %c0_i32_0 = arith.constant 0 : i32
    %c0_i32_1 = arith.constant 0 : i32
    return %c0_i32, %c0_i32_0 : i32, i32
  }
  func.func @transform_9(%arg0: i32) -> (i32, i32) {
    %c0_i32 = arith.constant 0 : i32
    %c0_i32_0 = arith.constant 0 : i32
    %c0_i32_1 = arith.constant 0 : i32
    return %c0_i32, %c0_i32_0 : i32, i32
  }
  func.func @transform_10(%arg0: i32) -> (i32, i32, i32) {
    %c0_i32 = arith.constant 0 : i32
    %c0_i32_0 = arith.constant 0 : i32
    %c0_i32_1 = arith.constant 0 : i32
    return %c0_i32, %arg0, %c0_i32_0 : i32, i32, i32
  }
  func.func @transform_11(%arg0: i32) -> (i32, i32, i32) {
    %c0_i32 = arith.constant 0 : i32
    %c0_i32_0 = arith.constant 0 : i32
    %c0_i32_1 = arith.constant 0 : i32
    return %c0_i32, %arg0, %c0_i32_0 : i32, i32, i32
  }
}

</mosaic_0001>

<bundles_post_ra>
// kernel: tpu_custom_call.1
= control target key start
LH: loop header
LB: loop body
LE: loop exit
PB: predicated region body
PF: predicated region fallthrough
CT: control target
= control target key end

     0   :  { %17 = vsyncpa [#allocation4], 0  ;;  %s3110_s0 = inlined_call_operand.hbm [shape: f32[8,2,16], index: 0, kind: input, shape index: {}]   ;;  %s3111_s1 = inlined_call_operand.hbm [shape: f32[2,2,32], index: 1, kind: input, shape index: {}]   ;;  %s3112_s2 = inlined_call_operand.hbm [shape: f32[16,32], index: 2, kind: input, shape index: {}]   ;;  %s3113_s3 = inlined_call_operand.hbm [shape: f32[32,32], index: 3, kind: input, shape index: {}]   ;;  %s3114_s4 = inlined_call_operand.vmem [shape: f32[1,32], index: 4, kind: input, shape index: {}]   ;;  %s3115_s5 = inlined_call_operand.hbm [shape: f32[32,32], index: 5, kind: input, shape index: {}]   ;;  %s3116_s6 = inlined_call_operand.hbm [shape: f32[32,32], index: 6, kind: input, shape index: {}]   ;;  %s3117_s7 = inlined_call_operand.vmem [shape: f32[1,32], index: 7, kind: input, shape index: {}]   ;;  %s3118_s8 = inlined_call_operand.hbm [shape: f32[32,128], index: 8, kind: input, shape index: {}]   ;;  %s3119_s9 = inlined_call_operand.vmem [shape: f32[1,128], index: 9, kind: input, shape index: {}]   ;;  %s3120_s10 = inlined_call_operand.hbm [shape: f32[8,2,128], index: 10, kind: output, shape index: {0}]   ;;  %s3121_s11 = inlined_call_operand.hbm [shape: f32[2,2,32], index: 11, kind: output, shape index: {1}]  }
   0x1   :  { %18 = vsyncpa [#allocation7], 0 }
   0x2   :  { %19 = vsyncpa [#allocation10], 0 }
   0x3   :  { %20 = vsyncpa [#allocation13], 0 }
   0x4   :  { %21 = vsyncpa [#allocation5], 0 }
   0x5   :  { %22 = vsyncpa [#allocation17], 0  ;;  %s2705_s17 = smov [#allocation6]   ;;  %s2495_s21 = scalar_lea.hbm %s3111_s1, 64 }
   0x6   :  { %s40_s18 = sshll.u32 %s2705_s17, 4  ;;  %p2496_p0 = scmp.ne.s32.totalorder %s3111_s1, %s2495_s21  ;;  %s41_s18 = int_to_ptr.vmem [resolvable:$true] %s40_s18 }
   0x7   :  { %p2499_p1 = scmp.lt.u32.totalorder %s2495_s21, %s3111_s1 }
   0x9   :  { %p2501_p2 = pnand %p2499_p1, %p2496_p0 }
   0xb   :  { %2504 = shalt.err (!%p2501_p2)
}
   0xc   :  { %s2505_s26 = scalar_lea.vmem %s41_s18, 64  ;;  %p2510_p4 = scmp.lt.s32.totalorder %s41_s18, %s41_s18 }
   0xd   :  { %p2506_p3 = scmp.ne.s32.totalorder %s41_s18, %s2505_s26  ;;  %p2511_p5 = scmp.lt.s32.totalorder %s2505_s26, %s2505_s26 }
   0xf   :  { %p2512_p6 = por %p2511_p5, %p2510_p4 }
  0x11   :  { %p2513_p7 = pnand %p2512_p6, %p2506_p3 }
  0x13   :  { %2516 = shalt.err (!%p2513_p7)
}
  0x14   :  { %s2706_s27 = smov 32   ;;  %s2707_s28 = smov 2  }
  0x15   :  { %46 = dma.hbm_to_vmem [thread:$0]  %s3111_s1, 64, %s41_s18, [#allocation7], %s2706_s27, %s2706_s27, %s2707_s28  }
  0x16   :  { %s2708_s12 = smov [#allocation9]   ;;  %s2709_s14 = smov [#allocation12]  }
  0x17   :  { %s64_s13 = sshll.u32 %s2708_s12, 4  ;;  %s90_s15 = sshll.u32 %s2709_s14, 4  ;;  %s65_s13 = int_to_ptr.vmem [resolvable:$true] %s64_s13  ;;  %s91_s15 = int_to_ptr.vmem [resolvable:$true] %s90_s15 }
  0x18   :  { %s2517_s19 = scalar_lea.hbm %s3113_s3, 512 }
  0x19   :  { %p2518_p8 = scmp.ne.s32.totalorder %s3113_s3, %s2517_s19  ;;  %p2521_p9 = scmp.lt.u32.totalorder %s2517_s19, %s3113_s3 }
  0x1b   :  { %p2523_p10 = pnand %p2521_p9, %p2518_p8 }
  0x1d   :  { %2526 = shalt.err (!%p2523_p10)
}
  0x1e   :  { %s2527_s1 = scalar_lea.vmem %s65_s13, 512  ;;  %p2532_p12 = scmp.lt.s32.totalorder %s65_s13, %s65_s13 }
  0x1f   :  { %p2528_p11 = scmp.ne.s32.totalorder %s65_s13, %s2527_s1  ;;  %p2533_p13 = scmp.lt.s32.totalorder %s2527_s1, %s2527_s1 }
  0x21   :  { %p2534_p0 = por %p2533_p13, %p2532_p12 }
  0x23   :  { %p2535_p1 = pnand %p2534_p0, %p2528_p11 }
  0x25   :  { %2538 = shalt.err (!%p2535_p1)
}
  0x26   :  { %s2710_s18 = smov 128   ;;  %s2711_s24 = smov 8  }
  0x27   :  { %70 = dma.hbm_to_vmem [thread:$0]  %s3113_s3, 512, %s65_s13, [#allocation10], %s2710_s18, %s2710_s18, %s2711_s24  }
  0x28   :  { %s2539_s12 = scalar_lea.hbm %s3116_s6, 512 }
  0x29   :  { %p2540_p2 = scmp.ne.s32.totalorder %s3116_s6, %s2539_s12  ;;  %p2543_p3 = scmp.lt.u32.totalorder %s2539_s12, %s3116_s6 }
  0x2b   :  { %p2545_p4 = pnand %p2543_p3, %p2540_p2 }
  0x2d   :  { %2548 = shalt.err (!%p2545_p4)
}
  0x2e   :  { %s2549_s20 = scalar_lea.vmem %s91_s15, 512  ;;  %p2554_p6 = scmp.lt.s32.totalorder %s91_s15, %s91_s15 }
  0x2f   :  { %p2550_p5 = scmp.ne.s32.totalorder %s91_s15, %s2549_s20  ;;  %p2555_p7 = scmp.lt.s32.totalorder %s2549_s20, %s2549_s20 }
  0x31   :  { %p2556_p8 = por %p2555_p7, %p2554_p6 }
  0x33   :  { %p2557_p9 = pnand %p2556_p8, %p2550_p5 }
  0x35   :  { %2560 = shalt.err (!%p2557_p9)
}
  0x36   :  { %96 = dma.hbm_to_vmem [thread:$0]  %s3116_s6, 512, %s91_s15, [#allocation13], %s2710_s18, %s2710_s18, %s2711_s24  }
  0x37   :  { %s2712_s21 = smov [#allocation3]   ;;  %s2713_s23 = smov [#allocation8]  }
  0x38   :  { %s28_s22 = sshll.u32 %s2712_s21, 4  ;;  %s52_s1 = sshll.u32 %s2713_s23, 4  ;;  %s29_s22 = int_to_ptr.vmem [resolvable:$true] %s28_s22  ;;  %s53_s1 = int_to_ptr.vmem [resolvable:$true] %s52_s1 }
  0x39   :  { %s2561_s29 = scalar_lea.hbm %s3110_s0, 256 }
  0x3a   :  { %p2562_p10 = scmp.ne.s32.totalorder %s3110_s0, %s2561_s29  ;;  %p2565_p11 = scmp.lt.u32.totalorder %s2561_s29, %s3110_s0 }
  0x3c   :  { %p2567_p12 = pnand %p2565_p11, %p2562_p10 }
  0x3e   :  { %2570 = shalt.err (!%p2567_p12)
}
  0x3f   :  { %s2571_s6 = scalar_lea.vmem %s29_s22, 256  ;;  %p2576_p0 = scmp.lt.s32.totalorder %s29_s22, %s29_s22 }
  0x40   :  { %p2572_p13 = scmp.ne.s32.totalorder %s29_s22, %s2571_s6  ;;  %p2577_p1 = scmp.lt.s32.totalorder %s2571_s6, %s2571_s6 }
  0x42   :  { %p2578_p2 = por %p2577_p1, %p2576_p0 }
  0x44   :  { %p2579_p3 = pnand %p2578_p2, %p2572_p13 }
  0x46   :  { %2582 = shalt.err (!%p2579_p3)
}
  0x47   :  { %34 = dma.hbm_to_vmem [thread:$0]  %s3110_s0, 256, %s29_s22, [#allocation4], %s2706_s27, %s2706_s27, %s2707_s28  }
  0x48   :  { %s2583_s3 = scalar_lea.hbm %s3112_s2, 256 }
  0x49   :  { %p2584_p4 = scmp.ne.s32.totalorder %s3112_s2, %s2583_s3  ;;  %p2587_p5 = scmp.lt.u32.totalorder %s2583_s3, %s3112_s2 }
  0x4b   :  { %p2589_p6 = pnand %p2587_p5, %p2584_p4 }
  0x4d   :  { %2592 = shalt.err (!%p2589_p6)
}
  0x4e   :  { %s2593_s26 = scalar_lea.vmem %s53_s1, 256  ;;  %p2598_p8 = scmp.lt.s32.totalorder %s53_s1, %s53_s1 }
  0x4f   :  { %p2594_p7 = scmp.ne.s32.totalorder %s53_s1, %s2593_s26  ;;  %p2599_p9 = scmp.lt.s32.totalorder %s2593_s26, %s2593_s26 }
  0x51   :  { %p2600_p10 = por %p2599_p9, %p2598_p8 }
  0x53   :  { %p2601_p11 = pnand %p2600_p10, %p2594_p7 }
  0x55   :  { %2604 = shalt.err (!%p2601_p11)
}
  0x56   :  { %58 = dma.hbm_to_vmem [thread:$0]  %s3112_s2, 256, %s53_s1, [#allocation7], %s2710_s18, %s2710_s18, %s2711_s24  }
  0x57   :  { %s2714_s29 = smov [#allocation11]   ;;  %s2715_s12 = smov [#allocation14]  }
  0x58   :  { %s78_s30 = sshll.u32 %s2714_s29, 4  ;;  %s104_s14 = sshll.u32 %s2715_s12, 4  ;;  %s79_s30 = int_to_ptr.vmem [resolvable:$true] %s78_s30  ;;  %s105_s14 = int_to_ptr.vmem [resolvable:$true] %s104_s14 }
  0x59   :  { %s2605_s15 = scalar_lea.hbm %s3115_s5, 512 }
  0x5a   :  { %p2606_p12 = scmp.ne.s32.totalorder %s3115_s5, %s2605_s15  ;;  %p2609_p13 = scmp.lt.u32.totalorder %s2605_s15, %s3115_s5 }
  0x5c   :  { %p2611_p0 = pnand %p2609_p13, %p2606_p12 }
  0x5e   :  { %2614 = shalt.err (!%p2611_p0)
}
  0x5f   :  { %s2615_s2 = scalar_lea.vmem %s79_s30, 512  ;;  %p2620_p2 = scmp.lt.s32.totalorder %s79_s30, %s79_s30 }
  0x60   :  { %p2616_p1 = scmp.ne.s32.totalorder %s79_s30, %s2615_s2  ;;  %p2621_p3 = scmp.lt.s32.totalorder %s2615_s2, %s2615_s2 }
  0x62   :  { %p2622_p4 = por %p2621_p3, %p2620_p2 }
  0x64   :  { %p2623_p5 = pnand %p2622_p4, %p2616_p1 }
  0x66   :  { %2626 = shalt.err (!%p2623_p5)
}
  0x67   :  { %84 = dma.hbm_to_vmem [thread:$0]  %s3115_s5, 512, %s79_s30, [#allocation10], %s2710_s18, %s2710_s18, %s2711_s24  }
  0x68   :  { %s2627_s25 = scalar_lea.hbm %s3118_s8, 512 }
  0x69   :  { %p2628_p6 = scmp.ne.s32.totalorder %s3118_s8, %s2627_s25  ;;  %p2631_p7 = scmp.lt.u32.totalorder %s2627_s25, %s3118_s8 }
  0x6b   :  { %p2633_p8 = pnand %p2631_p7, %p2628_p6 }
  0x6d   :  { %2636 = shalt.err (!%p2633_p8)
}
  0x6e   :  { %s2637_s12 = scalar_lea.vmem %s105_s14, 512  ;;  %p2642_p10 = scmp.lt.s32.totalorder %s105_s14, %s105_s14 }
  0x6f   :  { %p2638_p9 = scmp.ne.s32.totalorder %s105_s14, %s2637_s12  ;;  %p2643_p11 = scmp.lt.s32.totalorder %s2637_s12, %s2637_s12 }
  0x71   :  { %p2644_p12 = por %p2643_p11, %p2642_p10 }
  0x73   :  { %p2645_p13 = pnand %p2644_p12, %p2638_p9 }
  0x75   :  { %2648 = shalt.err (!%p2645_p13)
}
  0x76   :  { %110 = dma.hbm_to_vmem [thread:$0]  %s3118_s8, 512, %s105_s14, [#allocation13], %s2710_s18, %s2710_s18, %s2711_s24  }
  0x77   :  { %2693 = dma.done.wait [#allocation4], 256  }
  0x78   :  { %2694 = vsyncadd [#allocation4], 4294967040 }
  0x79   :  { %2695 = dma.done.wait [#allocation7], 320  }
  0x7a   :  { %2696 = vsyncadd [#allocation7], 4294966976 }
  0x7b   :  { %2697 = dma.done.wait [#allocation10], 1024  }
  0x7c   :  { %2698 = vsyncadd [#allocation10], 4294966272 }
  0x7d   :  { %2699 = dma.done.wait [#allocation13], 1024  }
  0x7e   :  { %2700 = vsyncadd [#allocation13], 4294966272  ;;  %v168_v0 = vlaneseq  ;;  %v2716_v1 = vmov 1983009808   ;;  %v2717_v3 = vmov 0.0|0.0   ;;  %vm2718_vm0 = vmmov 0  }
  0x7f   :  { %v166_v2 = vunpack.c.l.s4 %v2716_v1  ;;  %2334 = vmatprep.subr.bf16.mxu1 %v2717_v3  ;;  %v2719_v4 = vmov 0.0   ;;  %v134_v7 = vld [vmem:[#allocation8] sm:$0xff]  ;;  %v135_v8 = vld [vmem:[#allocation8 + $0x8] sm:$0xff]  ;;  %v143_v13 = vld [vmem:[#allocation3 + $0x4] sm:$0x3]  ;;  %vm197_vm1 = vcmask 130048  }
  0x80   :  { %2140 = vmatprep.mubr.msk.f32.mxu1 %vm2718_vm0, %v2719_v4  ;;  %v169_v6 = vshrl.u32 %v168_v0, 7  ;;  %v141_v9 = vld [vmem:[#allocation3] sm:$0x3]  ;;  %v2330_v11 = vpack.c.bf16 %v135_v8, %v134_v7  ;;  %v142_v12 = vld [vmem:[#allocation3 + $0x2] sm:$0x3]  ;;  %v136_v22 = vld [vmem:[#allocation9] sm:$0xff] }
  0x81   :  { %v167_v5 = vunpack.c.0.s8 %v166_v2  ;;  %v144_v14 = vld [vmem:[#allocation3 + $0x6] sm:$0x3]  ;;  %v163_v15 = vcombine.low %v141_v9, %v142_v12  ;;  %v145_v17 = vld [vmem:[#allocation3 + $0x8] sm:$0x3]  ;;  %v146_v18 = vld [vmem:[#allocation3 + $0xa] sm:$0x3] }
  0x82   :  { %v164_v16 = vcombine.low %v143_v13, %v144_v14  ;;  %v147_v19 = vld [vmem:[#allocation3 + $0xc] sm:$0x3]  ;;  %2331 = vmatprep.subr.bf16.mxu0 %v2330_v11  ;;  %v148_v20 = vld [vmem:[#allocation3 + $0xe] sm:$0x3]  ;;  %v180_v21 = vcombine.low %v145_v17, %v146_v18  ;;  %v138_v28 = vld [vmem:[#allocation9 + $0x10] sm:$0xff]  ;;  %vm332_vm2 = vcmask 261120  }
  0x83   :  { %v2890_v10 = vsub.s32 %v167_v5, %v169_v6  ;;  %v137_v23 = vld [vmem:[#allocation9 + $0x8] sm:$0xff]  ;;  %2333 = vmatpush3.bf16.msra.mxu0 %v2330_v11  ;;  %v181_v26 = vcombine.low %v147_v19, %v148_v20  ;;  %v139_v29 = vld [vmem:[#allocation9 + $0x18] sm:$0xff]  ;;  %vm321_vm3 = vcmask 254976  }
  0x84   :  { %v2894_v27 = vpack.c.bf16 %v137_v23, %v136_v22  ;;  %2340 = vmatprep.subr.bf16.mxu0 %v2717_v3  ;;  %v2900_v33 = vpack.c.bf16 %v139_v29, %v138_v28  ;;  %v330_v35 = vld [vmem:[#allocation6] sm:$0x3] }
  0x85   :  { %v171_v24 = vrot.slane %v163_v15, %v2890_v10  ;;  %v178_v25 = vrot.slane %v164_v16, %v2890_v10  ;;  %v188_v30 = vrot.slane %v180_v21, %v2890_v10  ;;  %v195_v32 = vrot.slane %v181_v26, %v2890_v10  ;;  %v2000_v36 = vld [vmem:[%s3114_s4] ss:$0 sm:$0xff] }
  0x86   :  { %2336 = vmatpush3.bf16.msra.mxu1 %v2894_v27 }
  0x87   :  { %v179_v31 = vcombine.low %v171_v24, %v178_v25  ;;  %2337 = vmatprep.subr.bf16.mxu1 %v2717_v3  ;;  %v196_v34 = vcombine.low %v188_v30, %v195_v32 }
  0x89   :  { %2129 = vmatprep.mubr.msk.f32.mxu0 %vm197_vm1, %v179_v31 }
  0x8a   :  { %2130 = vmatmul.mubr.msk.f32.vlgmr.msra.gmra.mrb[0].mxu0 %vm197_vm1, %v196_v34  ;;  %2339 = vmatpush3.bf16.msra.mxu1 %v2900_v33  ;;  %v956_v34 = vld [vmem:[#allocation11] sm:$0xff] }
  0x8b   :  { %2342 = vmatpush3.bf16.msra.mxu0 %v2894_v27  ;;  %2151 = vmatprep.mubr.msk.f32.mxu0 %vm2718_vm0, %v2719_v4 }
  0x8c   :  { %2343 = vmatprep.subr.bf16.mxu0 %v2717_v3  ;;  %2346 = vmatprep.subr.bf16.mxu1 %v2717_v3 }
  0x8d   :  { %2141 = vmatmul.mubr.msk.f32.vlgmr.msra.gmra.mrb[0].mxu1 %vm332_vm2, %v330_v35  ;;  %v957_v35 = vld [vmem:[#allocation11 + $0x8] sm:$0xff] }
  0x8e   :  { %2348 = vmatpush3.bf16.msra.mxu1 %v2894_v27  ;;  %2162 = vmatprep.mubr.msk.f32.mxu1 %vm2718_vm0, %v2719_v4 }
  0x8f   :  { %2345 = vmatpush3.bf16.msra.mxu0 %v2900_v33  ;;  %2349 = vmatprep.subr.bf16.mxu1 %v2717_v3 }
  0x90   :  { %2352 = vmatprep.subr.bf16.mxu0 %v2717_v3 }
  0x92   :  { %2351 = vmatpush3.bf16.msra.mxu1 %v2900_v33 }
  0x93   :  { %2358 = vmatprep.subr.bf16.mxu1 %v2717_v3 }
 0x15d   :  { %v2131_v37 = vpop.f32.mrb[0].mxu0 }
 0x15e   :  { %v274_v38 = vadd.f32 %v2131_v37, %v2000_v36  ;;  %v268_v39 = vpop.f32.mrb[1].mxu0  ;;  %v2382_v37 = vpack.c.bf16 %v957_v35, %v956_v34 }
 0x15f   :  { %v269_v40 = vadd.f32 %v2000_v36, %v268_v39  ;;  %v958_v36 = vld [vmem:[#allocation11 + $0x10] sm:$0xff] }
 0x160   :  { %v296_v41 = vcombine.high %v274_v38, %v274_v38  ;;  %v303_v42 = vrot.slane %v274_v38, %v2890_v10  ;;  %v402_v43 = vpop.f32.mrb[0].mxu1  ;;  %v959_v38 = vld [vmem:[#allocation11 + $0x18] sm:$0xff] }
 0x161   :  { %v279_v44 = vcombine.high %v269_v40, %v269_v40  ;;  %v286_v45 = vrot.slane %v269_v40, %v2890_v10  ;;  %v2142_v46 = vpop.f32.mrb[1].mxu1  ;;  %v2386_v39 = vpack.c.bf16 %v959_v38, %v958_v36  ;;  %v960_v40 = vld [vmem:[#allocation12] sm:$0xff] }
 0x162   :  { %v310_v47 = vrot.slane %v296_v41, %v2890_v10  ;;  %v311_v48 = vcombine.high %v303_v42, %v303_v42  ;;  %326 = vst.msk [vmem:[#allocation2 + $0x8] sm:$0x3] %vm321_vm3, %v303_v42  ;;  %v961_v41 = vld [vmem:[#allocation12 + $0x8] sm:$0xff]  ;;  %v962_v42 = vld [vmem:[#allocation12 + $0x10] sm:$0xff] }
 0x163   :  { %v293_v49 = vrot.slane %v279_v44, %v2890_v10  ;;  %v294_v50 = vcombine.high %v286_v45, %v286_v45  ;;  %322 = vst.msk [vmem:[#allocation2] sm:$0x3] %vm321_vm3, %v286_v45  ;;  %v963_v44 = vld [vmem:[#allocation12 + $0x18] sm:$0xff]  ;;  %v1153_v46 = vld [vmem:[#allocation6 + $0x2] sm:$0x3] }
 0x164   :  { %v312_v51 = vcombine.high %v310_v47, %v310_v47  ;;  %327 = vst.msk [vmem:[#allocation2 + $0xa] sm:$0x3] %vm321_vm3, %v311_v48  ;;  %328 = vst.msk [vmem:[#allocation2 + $0xc] sm:$0x3] %vm321_vm3, %v310_v47  ;;  %v2985_v45 = vpack.c.bf16 %v963_v44, %v962_v42 }
 0x165   :  { %v295_v52 = vcombine.high %v293_v49, %v293_v49  ;;  %323 = vst.msk [vmem:[#allocation2 + $0x2] sm:$0x3] %vm321_vm3, %v294_v50  ;;  %324 = vst.msk [vmem:[#allocation2 + $0x4] sm:$0x3] %vm321_vm3, %v293_v49 }
 0x166   :  { %329 = vst.msk [vmem:[#allocation2 + $0xe] sm:$0x3] %vm321_vm3, %v312_v51 }
 0x167   :  { %325 = vst.msk [vmem:[#allocation2 + $0x6] sm:$0x3] %vm321_vm3, %v295_v52 }
 0x169   :  { %v644_v9 = vld [vmem:[#allocation2 + $0x8] sm:$0x3] }
 0x16a   :  { %v331_v53 = vld [vmem:[#allocation2] sm:$0x3] }
 0x16b   :  { %v406_v54 = vadd.f32 %v402_v43, %v331_v53  ;;  %v722_v15 = vld [vmem:[#allocation2 + $0xa] sm:$0x3]  ;;  %v800_v29 = vld [vmem:[#allocation2 + $0xc] sm:$0x3]  ;;  %v2982_v43 = vpack.c.bf16 %v961_v41, %v960_v40 }
 0x16c   :  { %v410_v56 = vld [vmem:[#allocation2 + $0x2] sm:$0x3]  ;;  %v488_v61 = vld [vmem:[#allocation2 + $0x4] sm:$0x3] }
 0x16d   :  { %2463 = vtanh.f32 %v406_v54  ;;  %v878_v47 = vld [vmem:[#allocation2 + $0xe] sm:$0x3] }
 0x16e   :  { %v566_v2 = vld [vmem:[#allocation2 + $0x6] sm:$0x3] }
 0x177   :  { %v2464_v55 = vpop.eup %2463 }
 0x178   :  { %408 = vst.msk [vmem:[#allocation2] sm:$0x3] %vm321_vm3, %v2464_v55  ;;  %2152 = vmatmul.mubr.msk.f32.vlgmr.msra.gmra.mrb[2].mxu0 %vm332_vm2, %v2464_v55 }
 0x179   :  { %2354 = vmatpush3.bf16.msra.mxu0 %v2894_v27  ;;  %2173 = vmatprep.mubr.msk.f32.mxu0 %vm2718_vm0, %v2719_v4 }
 0x17a   :  { %2355 = vmatprep.subr.bf16.mxu0 %v2717_v3 }
 0x17d   :  { %2357 = vmatpush3.bf16.msra.mxu0 %v2900_v33 }
 0x17e   :  { %2364 = vmatprep.subr.bf16.mxu0 %v2717_v3 }
 0x17f   :  { %v965_v23 = vld [vmem:[#allocation2] sm:$0x3] }
 0x24b   :  { %v480_v57 = vpop.f32.mrb[2].mxu0 }
 0x24c   :  { %v484_v58 = vadd.f32 %v480_v57, %v410_v56  ;;  %v2153_v59 = vpop.f32.mrb[3].mxu0 }
 0x24e   :  { %2465 = vtanh.f32 %v484_v58 }
 0x258   :  { %v2466_v60 = vpop.eup %2465 }
 0x259   :  { %486 = vst.msk [vmem:[#allocation2 + $0x2] sm:$0x3] %vm321_vm3, %v2466_v60  ;;  %2163 = vmatmul.mubr.msk.f32.vlgmr.msra.gmra.mrb[2].mxu1 %vm332_vm2, %v2466_v60 }
 0x25a   :  { %2360 = vmatpush3.bf16.msra.mxu1 %v2894_v27  ;;  %2184 = vmatprep.mubr.msk.f32.mxu1 %vm2718_vm0, %v2719_v4 }
 0x25b   :  { %2361 = vmatprep.subr.bf16.mxu1 %v2717_v3 }
 0x25e   :  { %2363 = vmatpush3.bf16.msra.mxu1 %v2900_v33 }
 0x25f   :  { %2370 = vmatprep.subr.bf16.mxu1 %v2717_v3 }
 0x260   :  { %v966_v20 = vld [vmem:[#allocation2 + $0x2] sm:$0x3] }
 0x261   :  { %v987_v24 = vcombine.low %v965_v23, %v966_v20 }
 0x263   :  { %v995_v26 = vrot.slane %v987_v24, %v2890_v10 }
 0x32c   :  { %v558_v62 = vpop.f32.mrb[2].mxu1 }
 0x32d   :  { %v562_v63 = vadd.f32 %v558_v62, %v488_v61  ;;  %v2164_v0 = vpop.f32.mrb[3].mxu1 }
 0x32f   :  { %2467 = vtanh.f32 %v562_v63  ;;  %v2011_v63 = vld [vmem:[%s3117_s7] ss:$0 sm:$0xff]  ;;  %s2720_s7 = smov [#allocation16]  }
 0x330   :  { %s1981_s14 = sshll.u32 %s2720_s7, 4  ;;  %s1982_s14 = int_to_ptr.vmem [resolvable:$true] %s1981_s14 }
 0x331   :  { %s2649_s16 = scalar_lea.vmem %s1982_s14, 64  ;;  %p2654_p1 = scmp.lt.s32.totalorder %s1982_s14, %s1982_s14 }
 0x332   :  { %p2650_p0 = scmp.ne.s32.totalorder %s1982_s14, %s2649_s16  ;;  %p2655_p2 = scmp.lt.s32.totalorder %s2649_s16, %s2649_s16 }
 0x334   :  { %p2656_p3 = por %p2655_p2, %p2654_p1 }
 0x336   :  { %p2657_p4 = pnand %p2656_p3, %p2650_p0 }
 0x339   :  { %v2468_v1 = vpop.eup %2467 }
 0x33a   :  { %564 = vst.msk [vmem:[#allocation2 + $0x4] sm:$0x3] %vm321_vm3, %v2468_v1  ;;  %2174 = vmatmul.mubr.msk.f32.vlgmr.msra.gmra.mrb[4].mxu0 %vm332_vm2, %v2468_v1 }
 0x33b   :  { %2366 = vmatpush3.bf16.msra.mxu0 %v2894_v27  ;;  %2195 = vmatprep.mubr.msk.f32.mxu0 %vm2718_vm0, %v2719_v4 }
 0x33c   :  { %2367 = vmatprep.subr.bf16.mxu0 %v2717_v3 }
 0x33f   :  { %2369 = vmatpush3.bf16.msra.mxu0 %v2900_v33 }
 0x340   :  { %2376 = vmatprep.subr.bf16.mxu0 %v2717_v3 }
 0x341   :  { %v967_v21 = vld [vmem:[#allocation2 + $0x4] sm:$0x3] }
 0x40d   :  { %v636_v5 = vpop.f32.mrb[4].mxu0 }
 0x40e   :  { %v640_v6 = vadd.f32 %v636_v5, %v566_v2  ;;  %v2175_v7 = vpop.f32.mrb[5].mxu0 }
 0x410   :  { %2469 = vtanh.f32 %v640_v6 }
 0x41a   :  { %v2470_v8 = vpop.eup %2469 }
 0x41b   :  { %642 = vst.msk [vmem:[#allocation2 + $0x6] sm:$0x3] %vm321_vm3, %v2470_v8  ;;  %2185 = vmatmul.mubr.msk.f32.vlgmr.msra.gmra.mrb[4].mxu1 %vm332_vm2, %v2470_v8 }
 0x41c   :  { %2372 = vmatpush3.bf16.msra.mxu1 %v2894_v27  ;;  %2206 = vmatprep.mubr.msk.f32.mxu1 %vm2718_vm0, %v2719_v4 }
 0x41d   :  { %2373 = vmatprep.subr.bf16.mxu1 %v2717_v3 }
 0x420   :  { %2375 = vmatpush3.bf16.msra.mxu1 %v2900_v33 }
 0x421   :  { %2383 = vmatprep.subr.bf16.mxu1 %v2382_v37 }
 0x422   :  { %v968_v19 = vld [vmem:[#allocation2 + $0x6] sm:$0x3] }
 0x423   :  { %v988_v22 = vcombine.low %v967_v21, %v968_v19 }
 0x425   :  { %v1002_v25 = vrot.slane %v988_v22, %v2890_v10 }
 0x427   :  { %v1003_v28 = vcombine.low %v995_v26, %v1002_v25 }
 0x4ee   :  { %v714_v11 = vpop.f32.mrb[4].mxu1 }
 0x4ef   :  { %v718_v12 = vadd.f32 %v714_v11, %v644_v9  ;;  %v2186_v13 = vpop.f32.mrb[5].mxu1 }
 0x4f1   :  { %2471 = vtanh.f32 %v718_v12 }
 0x4fb   :  { %v2472_v14 = vpop.eup %2471 }
 0x4fc   :  { %720 = vst.msk [vmem:[#allocation2 + $0x8] sm:$0x3] %vm321_vm3, %v2472_v14  ;;  %2196 = vmatmul.mubr.msk.f32.vlgmr.msra.gmra.mrb[6].mxu0 %vm332_vm2, %v2472_v14 }
 0x4fd   :  { %2378 = vmatpush3.bf16.msra.mxu0 %v2894_v27  ;;  %2217 = vmatprep.mubr.msk.f32.mxu0 %vm2718_vm0, %v2719_v4 }
 0x4fe   :  { %2379 = vmatprep.subr.bf16.mxu0 %v2717_v3 }
 0x501   :  { %2381 = vmatpush3.bf16.msra.mxu0 %v2900_v33 }
 0x502   :  { %2390 = vmatprep.subr.bf16.mxu0 %v2717_v3 }
 0x503   :  { %v969_v53 = vld [vmem:[#allocation2 + $0x8] sm:$0x3] }
 0x5cf   :  { %v792_v16 = vpop.f32.mrb[6].mxu0 }
 0x5d0   :  { %v796_v17 = vadd.f32 %v792_v16, %v722_v15  ;;  %v2197_v18 = vpop.f32.mrb[7].mxu0 }
 0x5d2   :  { %2473 = vtanh.f32 %v796_v17 }
 0x5dc   :  { %v2474_v27 = vpop.eup %2473 }
 0x5dd   :  { %798 = vst.msk [vmem:[#allocation2 + $0xa] sm:$0x3] %vm321_vm3, %v2474_v27  ;;  %2207 = vmatmul.mubr.msk.f32.vlgmr.msra.gmra.mrb[6].mxu1 %vm332_vm2, %v2474_v27 }
 0x5de   :  { %2228 = vmatprep.mubr.msk.f32.mxu1 %vm332_vm2, %v1003_v28  ;;  %2385 = vmatpush3.bf16.msra.mxu1 %v2382_v37 }
 0x5df   :  { %2387 = vmatprep.subr.bf16.mxu1 %v2386_v39 }
 0x5e2   :  { %2389 = vmatpush3.bf16.msra.mxu1 %v2386_v39 }
 0x5e3   :  { %2396 = vmatprep.subr.bf16.mxu1 %v2717_v3 }
 0x5e4   :  { %v970_v52 = vld [vmem:[#allocation2 + $0xa] sm:$0x3] }
 0x5e5   :  { %v1004_v54 = vcombine.low %v969_v53, %v970_v52 }
 0x5e7   :  { %v1012_v58 = vrot.slane %v1004_v54, %v2890_v10 }
 0x6b0   :  { %v870_v30 = vpop.f32.mrb[6].mxu1 }
 0x6b1   :  { %v874_v31 = vadd.f32 %v870_v30, %v800_v29  ;;  %v2208_v32 = vpop.f32.mrb[7].mxu1 }
 0x6b3   :  { %2475 = vtanh.f32 %v874_v31 }
 0x6bd   :  { %v2476_v33 = vpop.eup %2475 }
 0x6be   :  { %876 = vst.msk [vmem:[#allocation2 + $0xc] sm:$0x3] %vm321_vm3, %v2476_v33  ;;  %2218 = vmatmul.mubr.msk.f32.vlgmr.msra.gmra.mrb[8].mxu0 %vm332_vm2, %v2476_v33 }
 0x6bf   :  { %2239 = vmatprep.mubr.msk.f32.mxu0 %vm2718_vm0, %v2719_v4  ;;  %2392 = vmatpush3.bf16.msra.mxu0 %v2982_v43 }
 0x6c0   :  { %2393 = vmatprep.subr.bf16.mxu0 %v2717_v3 }
 0x6c3   :  { %2395 = vmatpush3.bf16.msra.mxu0 %v2985_v45 }
 0x6c4   :  { %2402 = vmatprep.subr.bf16.mxu0 %v2717_v3 }
 0x6c5   :  { %v971_v55 = vld [vmem:[#allocation2 + $0xc] sm:$0x3] }
 0x6c6   :  { %2240 = vmatmul.mubr.msk.f32.vlgmr.msra.gmra.mrb[10].mxu0 %vm332_vm2, %v1153_v46 }
 0x6c7   :  { %2404 = vmatpush3.bf16.msra.mxu0 %v2982_v43  ;;  %2261 = vmatprep.mubr.msk.f32.mxu0 %vm2718_vm0, %v2719_v4 }
 0x6c8   :  { %2405 = vmatprep.subr.bf16.mxu0 %v2717_v3 }
 0x6cb   :  { %2407 = vmatpush3.bf16.msra.mxu0 %v2985_v45 }
 0x6cc   :  { %2414 = vmatprep.subr.bf16.mxu0 %v2717_v3 }
 0x791   :  { %v948_v48 = vpop.f32.mrb[8].mxu0 }
 0x792   :  { %v952_v49 = vadd.f32 %v948_v48, %v878_v47  ;;  %v2219_v50 = vpop.f32.mrb[9].mxu0 }
 0x794   :  { %2477 = vtanh.f32 %v952_v49 }
 0x799   :  { %v1224_v61 = vpop.f32.mrb[10].mxu0 }
 0x79a   :  { %v2241_v62 = vpop.f32.mrb[11].mxu0 }
 0x79e   :  { %v2478_v51 = vpop.eup %2477 }
 0x79f   :  { %954 = vst.msk [vmem:[#allocation2 + $0xe] sm:$0x3] %vm321_vm3, %v2478_v51  ;;  %955 = vst.msk [vmem:[#allocation16] sm:$0x3] %vm321_vm3, %v2478_v51 }
 0x7a6   :  { %v972_v56 = vld [vmem:[#allocation2 + $0xe] sm:$0x3] }
 0x7a7   :  { %v1005_v57 = vcombine.low %v971_v55, %v972_v56 }
 0x7a9   :  { %v1019_v59 = vrot.slane %v1005_v57, %v2890_v10  ;;  %v1780_v57 = vld [vmem:[#allocation14] sm:$0xff] }
 0x7ab   :  { %v1020_v60 = vcombine.low %v1012_v58, %v1019_v59  ;;  %v1781_v58 = vld [vmem:[#allocation14 + $0x8] sm:$0xff]  ;;  %v1782_v59 = vld [vmem:[#allocation14 + $0x10] sm:$0xff] }
 0x7ad   :  { %2229 = vmatmul.mubr.msk.f32.vlgmr.msra.gmra.mrb[8].mxu1 %vm332_vm2, %v1020_v60  ;;  %v2438_v60 = vpack.c.bf16 %v1781_v58, %v1780_v57 }
 0x7ae   :  { %2398 = vmatpush3.bf16.msra.mxu1 %v2982_v43  ;;  %2250 = vmatprep.mubr.msk.f32.mxu1 %vm2718_vm0, %v2719_v4 }
 0x7af   :  { %2399 = vmatprep.subr.bf16.mxu1 %v2717_v3 }
 0x7b2   :  { %2401 = vmatpush3.bf16.msra.mxu1 %v2985_v45 }
 0x7b3   :  { %2408 = vmatprep.subr.bf16.mxu1 %v2717_v3 }
 0x880   :  { %v2230_v0 = vpop.f32.mrb[8].mxu1 }
 0x881   :  { %v1097_v1 = vadd.f32 %v2230_v0, %v2011_v63  ;;  %v1091_v2 = vpop.f32.mrb[9].mxu1 }
 0x882   :  { %v1092_v5 = vadd.f32 %v2011_v63, %v1091_v2 }
 0x883   :  { %v1119_v6 = vcombine.high %v1097_v1, %v1097_v1  ;;  %v1126_v7 = vrot.slane %v1097_v1, %v2890_v10 }
 0x884   :  { %v1102_v8 = vcombine.high %v1092_v5, %v1092_v5  ;;  %v1109_v9 = vrot.slane %v1092_v5, %v2890_v10 }
 0x885   :  { %v1133_v11 = vrot.slane %v1119_v6, %v2890_v10  ;;  %v1134_v12 = vcombine.high %v1126_v7, %v1126_v7  ;;  %1148 = vst.msk [vmem:[#allocation2 + $0x8] sm:$0x3] %vm321_vm3, %v1126_v7 }
 0x886   :  { %v1116_v13 = vrot.slane %v1102_v8, %v2890_v10  ;;  %v1117_v14 = vcombine.high %v1109_v9, %v1109_v9  ;;  %1144 = vst.msk [vmem:[#allocation2] sm:$0x3] %vm321_vm3, %v1109_v9 }
 0x887   :  { %v1135_v15 = vcombine.high %v1133_v11, %v1133_v11  ;;  %1149 = vst.msk [vmem:[#allocation2 + $0xa] sm:$0x3] %vm321_vm3, %v1134_v12  ;;  %1150 = vst.msk [vmem:[#allocation2 + $0xc] sm:$0x3] %vm321_vm3, %v1133_v11 }
 0x888   :  { %v1118_v16 = vcombine.high %v1116_v13, %v1116_v13  ;;  %1145 = vst.msk [vmem:[#allocation2 + $0x2] sm:$0x3] %vm321_vm3, %v1117_v14  ;;  %1146 = vst.msk [vmem:[#allocation2 + $0x4] sm:$0x3] %vm321_vm3, %v1116_v13 }
 0x889   :  { %1151 = vst.msk [vmem:[#allocation2 + $0xe] sm:$0x3] %vm321_vm3, %v1135_v15 }
 0x88a   :  { %1147 = vst.msk [vmem:[#allocation2 + $0x6] sm:$0x3] %vm321_vm3, %v1118_v16 }
 0x88c   :  { %v1462_v35 = vld [vmem:[#allocation2 + $0x8] sm:$0x3] }
 0x88d   :  { %v1154_v17 = vld [vmem:[#allocation2] sm:$0x3] }
 0x88e   :  { %v1228_v18 = vadd.f32 %v1224_v61, %v1154_v17  ;;  %v1539_v40 = vld [vmem:[#allocation2 + $0xa] sm:$0x3]  ;;  %v1783_v61 = vld [vmem:[#allocation14 + $0x18] sm:$0xff] }
 0x88f   :  { %v1231_v20 = vld [vmem:[#allocation2 + $0x2] sm:$0x3]  ;;  %v1308_v25 = vld [vmem:[#allocation2 + $0x4] sm:$0x3]  ;;  %v2442_v62 = vpack.c.bf16 %v1783_v61, %v1782_v59 }
 0x890   :  { %2479 = vtanh.f32 %v1228_v18  ;;  %v1693_v63 = vld [vmem:[#allocation2 + $0xe] sm:$0x3] }
 0x891   :  { %v1385_v30 = vld [vmem:[#allocation2 + $0x6] sm:$0x3] }
 0x89a   :  { %v2480_v19 = vpop.eup %2479 }
 0x89b   :  { %1230 = vst.msk [vmem:[#allocation2] sm:$0x3] %vm321_vm3, %v2480_v19  ;;  %2251 = vmatmul.mubr.msk.f32.vlgmr.msra.gmra.mrb[10].mxu1 %vm332_vm2, %v2480_v19 }
 0x89c   :  { %2410 = vmatpush3.bf16.msra.mxu1 %v2982_v43  ;;  %2272 = vmatprep.mubr.msk.f32.mxu1 %vm2718_vm0, %v2719_v4 }
 0x89d   :  { %2411 = vmatprep.subr.bf16.mxu1 %v2717_v3 }
 0x8a0   :  { %2413 = vmatpush3.bf16.msra.mxu1 %v2985_v45 }
 0x8a1   :  { %2420 = vmatprep.subr.bf16.mxu1 %v2717_v3 }
 0x8a2   :  { %v1772_v50 = vld [vmem:[#allocation2] sm:$0x3] }
 0x96e   :  { %v1301_v21 = vpop.f32.mrb[10].mxu1 }
 0x96f   :  { %v1305_v22 = vadd.f32 %v1301_v21, %v1231_v20  ;;  %v2252_v23 = vpop.f32.mrb[11].mxu1 }
 0x971   :  { %2481 = vtanh.f32 %v1305_v22 }
 0x97b   :  { %v2482_v24 = vpop.eup %2481 }
 0x97c   :  { %1307 = vst.msk [vmem:[#allocation2 + $0x2] sm:$0x3] %vm321_vm3, %v2482_v24  ;;  %2262 = vmatmul.mubr.msk.f32.vlgmr.msra.gmra.mrb[12].mxu0 %vm332_vm2, %v2482_v24 }
 0x97d   :  { %2416 = vmatpush3.bf16.msra.mxu0 %v2982_v43  ;;  %2283 = vmatprep.mubr.msk.f32.mxu0 %vm2718_vm0, %v2719_v4 }
 0x97e   :  { %2417 = vmatprep.subr.bf16.mxu0 %v2717_v3 }
 0x981   :  { %2419 = vmatpush3.bf16.msra.mxu0 %v2985_v45 }
 0x982   :  { %2426 = vmatprep.subr.bf16.mxu0 %v2717_v3 }
 0x983   :  { %v1773_v47 = vld [vmem:[#allocation2 + $0x2] sm:$0x3] }
 0x984   :  { %v1799_v51 = vcombine.low %v1772_v50, %v1773_v47 }
 0x986   :  { %v1807_v52 = vrot.slane %v1799_v51, %v2890_v10 }
 0xa4f   :  { %v1378_v26 = vpop.f32.mrb[12].mxu0 }
 0xa50   :  { %v1382_v27 = vadd.f32 %v1378_v26, %v1308_v25  ;;  %v2263_v28 = vpop.f32.mrb[13].mxu0 }
 0xa52   :  { %2483 = vtanh.f32 %v1382_v27 }
 0xa5c   :  { %v2484_v29 = vpop.eup %2483 }
 0xa5d   :  { %1384 = vst.msk [vmem:[#allocation2 + $0x4] sm:$0x3] %vm321_vm3, %v2484_v29  ;;  %2273 = vmatmul.mubr.msk.f32.vlgmr.msra.gmra.mrb[12].mxu1 %vm332_vm2, %v2484_v29 }
 0xa5e   :  { %2422 = vmatpush3.bf16.msra.mxu1 %v2982_v43  ;;  %2294 = vmatprep.mubr.msk.f32.mxu1 %vm2718_vm0, %v2719_v4 }
 0xa5f   :  { %2423 = vmatprep.subr.bf16.mxu1 %v2717_v3 }
 0xa62   :  { %2425 = vmatpush3.bf16.msra.mxu1 %v2985_v45 }
 0xa63   :  { %2432 = vmatprep.subr.bf16.mxu1 %v2717_v3 }
 0xa64   :  { %v1774_v48 = vld [vmem:[#allocation2 + $0x4] sm:$0x3] }
 0xb30   :  { %v1455_v31 = vpop.f32.mrb[12].mxu1 }
 0xb31   :  { %v1459_v32 = vadd.f32 %v1455_v31, %v1385_v30  ;;  %v2274_v33 = vpop.f32.mrb[13].mxu1 }
 0xb33   :  { %2485 = vtanh.f32 %v1459_v32 }
 0xb3d   :  { %v2486_v34 = vpop.eup %2485 }
 0xb3e   :  { %1461 = vst.msk [vmem:[#allocation2 + $0x6] sm:$0x3] %vm321_vm3, %v2486_v34  ;;  %2284 = vmatmul.mubr.msk.f32.vlgmr.msra.gmra.mrb[14].mxu0 %vm332_vm2, %v2486_v34 }
 0xb3f   :  { %2428 = vmatpush3.bf16.msra.mxu0 %v2982_v43  ;;  %2305 = vmatprep.mubr.msk.f32.mxu0 %vm2718_vm0, %v2719_v4 }
 0xb40   :  { %2429 = vmatprep.subr.bf16.mxu0 %v2717_v3 }
 0xb43   :  { %2431 = vmatpush3.bf16.msra.mxu0 %v2985_v45 }
 0xb44   :  { %2439 = vmatprep.subr.bf16.mxu0 %v2438_v60 }
 0xb45   :  { %v1775_v46 = vld [vmem:[#allocation2 + $0x6] sm:$0x3] }
 0xb46   :  { %v1800_v49 = vcombine.low %v1774_v48, %v1775_v46 }
 0xc11   :  { %v1532_v36 = vpop.f32.mrb[14].mxu0 }
 0xc12   :  { %v1536_v37 = vadd.f32 %v1532_v36, %v1462_v35  ;;  %v2285_v38 = vpop.f32.mrb[15].mxu0 }
 0xc14   :  { %2487 = vtanh.f32 %v1536_v37 }
 0xc1e   :  { %v2488_v39 = vpop.eup %2487 }
 0xc1f   :  { %1538 = vst.msk [vmem:[#allocation2 + $0x8] sm:$0x3] %vm321_vm3, %v2488_v39  ;;  %2295 = vmatmul.mubr.msk.f32.vlgmr.msra.gmra.mrb[14].mxu1 %vm332_vm2, %v2488_v39 }
 0xc20   :  { %2434 = vmatpush3.bf16.msra.mxu1 %v2982_v43  ;;  %2316 = vmatprep.mubr.msk.f32.mxu1 %vm2718_vm0, %v2719_v4  ;;  %v1814_v43 = vrot.slane %v1800_v49, %v2890_v10 }
 0xc21   :  { %2435 = vmatprep.subr.bf16.mxu1 %v2717_v3  ;;  %v1616_v3 = vld [vmem:[#allocation2 + $0xc] sm:$0x3] }
 0xc22   :  { %v1815_v53 = vcombine.low %v1807_v52, %v1814_v43 }
 0xc24   :  { %2437 = vmatpush3.bf16.msra.mxu1 %v2985_v45 }
 0xc26   :  { %v1776_v7 = vld [vmem:[#allocation2 + $0x8] sm:$0x3] }
 0xcf2   :  { %v1609_v41 = vpop.f32.mrb[14].mxu1 }
 0xcf3   :  { %v1613_v42 = vadd.f32 %v1609_v41, %v1539_v40  ;;  %v2296_v44 = vpop.f32.mrb[15].mxu1 }
 0xcf5   :  { %2489 = vtanh.f32 %v1613_v42 }
 0xcff   :  { %v2490_v4 = vpop.eup %2489 }
 0xd00   :  { %1615 = vst.msk [vmem:[#allocation2 + $0xa] sm:$0x3] %vm321_vm3, %v2490_v4  ;;  %2306 = vmatmul.mubr.msk.f32.vlgmr.msra.gmra.mrb[16].mxu0 %vm332_vm2, %v2490_v4 }
 0xd01   :  { %2327 = vmatprep.mubr.msk.f32.mxu0 %vm332_vm2, %v1815_v53  ;;  %2441 = vmatpush3.bf16.msra.mxu0 %v2438_v60 }
 0xd02   :  { %2443 = vmatprep.subr.bf16.mxu0 %v2442_v62 }
 0xd05   :  { %2445 = vmatpush3.bf16.msra.mxu0 %v2442_v62 }
 0xd07   :  { %v1777_v6 = vld [vmem:[#allocation2 + $0xa] sm:$0x3] }
 0xd08   :  { %v1816_v8 = vcombine.low %v1776_v7, %v1777_v6 }
 0xd0a   :  { %v1824_v13 = vrot.slane %v1816_v8, %v2890_v10 }
 0xdd3   :  { %v1686_v45 = vpop.f32.mrb[16].mxu0 }
 0xdd4   :  { %v1690_v54 = vadd.f32 %v1686_v45, %v1616_v3  ;;  %v2307_v55 = vpop.f32.mrb[17].mxu0 }
 0xdd6   :  { %2491 = vtanh.f32 %v1690_v54 }
 0xde0   :  { %v2492_v56 = vpop.eup %2491 }
 0xde1   :  { %1692 = vst.msk [vmem:[#allocation2 + $0xc] sm:$0x3] %vm321_vm3, %v2492_v56  ;;  %2317 = vmatmul.mubr.msk.f32.vlgmr.msra.gmra.mrb[16].mxu1 %vm332_vm2, %v2492_v56 }
 0xde8   :  { %v1778_v9 = vld [vmem:[#allocation2 + $0xc] sm:$0x3] }
 0xeb4   :  { %v1763_v0 = vpop.f32.mrb[16].mxu1 }
 0xeb5   :  { %v1767_v1 = vadd.f32 %v1763_v0, %v1693_v63  ;;  %v2318_v2 = vpop.f32.mrb[17].mxu1 }
 0xeb7   :  { %2493 = vtanh.f32 %v1767_v1 }
 0xec1   :  { %v2494_v5 = vpop.eup %2493 }
 0xec2   :  { %1769 = vst.msk [vmem:[#allocation2 + $0xe] sm:$0x3] %vm321_vm3, %v2494_v5  ;;  %1771 = vst.msk [vmem:[#allocation16 + $0x2] sm:$0x3] %vm321_vm3, %v2494_v5 }
 0xec9   :  { %v1779_v11 = vld [vmem:[#allocation2 + $0xe] sm:$0x3] }
 0xeca   :  { %v1817_v12 = vcombine.low %v1778_v9, %v1779_v11 }
 0xecc   :  { %v1831_v14 = vrot.slane %v1817_v12, %v2890_v10 }
 0xece   :  { %v1832_v15 = vcombine.low %v1824_v13, %v1831_v14 }
 0xed0   :  { %2328 = vmatmul.mubr.msk.f32.vlgmr.msra.gmra.mrb[18].mxu0 %vm332_vm2, %v1832_v15 }
 0xed1   :  { %2660 = shalt.err (!%p2657_p4)
}
 0xed2   :  { %s2661_s17 = scalar_lea.hbm %s3121_s11, 64 }
 0xed3   :  { %p2662_p5 = scmp.ne.s32.totalorder %s3121_s11, %s2661_s17  ;;  %p2665_p6 = scmp.lt.u32.totalorder %s2661_s17, %s3121_s11 }
 0xed5   :  { %p2667_p7 = pnand %p2665_p6, %p2662_p5 }
 0xed7   :  { %2670 = shalt.err (!%p2667_p7)
}
 0xed8   :  { %1987 = dma.vmem_to_hbm [thread:$0]  %s1982_s14, 64, %s3121_s11, [#allocation17], %s2706_s27, %s2706_s27, %s2707_s28  }
 0xed9   :  { %v2022_v16 = vld [vmem:[%s3119_s9] ss:$0 sm:$0xff]  ;;  %s2721_s11 = smov [#allocation15]  }
 0xeda   :  { %s1969_s25 = sshll.u32 %s2721_s11, 4  ;;  %s1970_s25 = int_to_ptr.vmem [resolvable:$true] %s1969_s25 }
 0xedb   :  { %s2671_s9 = scalar_lea.vmem %s1970_s25, 256  ;;  %p2676_p9 = scmp.lt.s32.totalorder %s1970_s25, %s1970_s25 }
 0xedc   :  { %p2672_p8 = scmp.ne.s32.totalorder %s1970_s25, %s2671_s9  ;;  %p2677_p10 = scmp.lt.s32.totalorder %s2671_s9, %s2671_s9 }
 0xede   :  { %p2678_p11 = por %p2677_p10, %p2676_p9 }
 0xee0   :  { %p2679_p12 = pnand %p2678_p11, %p2672_p8 }
 0xfa3   :  { %v2329_v17 = vpop.f32.mrb[18].mxu0 }
 0xfa4   :  { %v1909_v18 = vadd.f32 %v2329_v17, %v2022_v16  ;;  %v1903_v19 = vpop.f32.mrb[19].mxu0 }
 0xfa5   :  { %v1904_v20 = vadd.f32 %v2022_v16, %v1903_v19 }
 0xfa6   :  { %v1931_v21 = vcombine.high %v1909_v18, %v1909_v18  ;;  %v1938_v22 = vrot.slane %v1909_v18, %v2890_v10  ;;  %2027 = vst.sshfl [vmem:[#allocation15 + $0x8] sm:$0x3 pattern:$0x76325410] %v1909_v18 }
 0xfa7   :  { %v1914_v23 = vcombine.high %v1904_v20, %v1904_v20  ;;  %v1921_v24 = vrot.slane %v1904_v20, %v2890_v10  ;;  %2025 = vst.sshfl [vmem:[#allocation15] sm:$0x3 pattern:$0x76325410] %v1904_v20 }
 0xfa8   :  { %v1945_v25 = vrot.slane %v1931_v21, %v2890_v10  ;;  %v1946_v26 = vcombine.high %v1938_v22, %v1938_v22  ;;  %2028 = vst.sshfl [vmem:[#allocation15 + $0xc] sm:$0x3 pattern:$0x76325410] %v1931_v21 }
 0xfa9   :  { %v1928_v27 = vrot.slane %v1914_v23, %v2890_v10  ;;  %v1929_v28 = vcombine.high %v1921_v24, %v1921_v24  ;;  %2026 = vst.sshfl [vmem:[#allocation15 + $0x4] sm:$0x3 pattern:$0x76325410] %v1914_v23 }
 0xfaa   :  { %v1947_v29 = vcombine.high %v1945_v25, %v1945_v25  ;;  %1961 = vst [vmem:[#allocation15 + $0xa] sm:$0x3] %v1946_v26 }
 0xfab   :  { %v1930_v30 = vcombine.high %v1928_v27, %v1928_v27  ;;  %1957 = vst [vmem:[#allocation15 + $0x2] sm:$0x3] %v1929_v28 }
 0xfac   :  { %1963 = vst [vmem:[#allocation15 + $0xe] sm:$0x3] %v1947_v29 }
 0xfad   :  { %1959 = vst [vmem:[#allocation15 + $0x6] sm:$0x3] %v1930_v30 }
 0xfae   :  { %2682 = shalt.err (!%p2679_p12)
}
 0xfaf   :  { %s2683_s22 = scalar_lea.hbm %s3120_s10, 256 }
 0xfb0   :  { %p2684_p13 = scmp.ne.s32.totalorder %s3120_s10, %s2683_s22  ;;  %p2687_p0 = scmp.lt.u32.totalorder %s2683_s22, %s3120_s10 }
 0xfb2   :  { %p2689_p1 = pnand %p2687_p0, %p2684_p13 }
 0xfb4   :  { %2692 = shalt.err (!%p2689_p1)
}
 0xfb5   :  { %1975 = dma.vmem_to_hbm [thread:$0]  %s1970_s25, 256, %s3120_s10, [#allocation5], %s2706_s27, %s2706_s27, %s2707_s28  }
 0xfb6   :  { %2701 = dma.done.wait [#allocation5], 256  }
 0xfb7   :  { %2702 = vsyncadd [#allocation5], 4294967040 }
 0xfb8   :  { %2703 = dma.done.wait [#allocation17], 64  }
 0xfb9   :  { %2704 = vsyncadd [#allocation17], 4294967232 }
 0xfba   :  { %1994 = vsyncpa [#allocation4], 1 }
 0xfbb   :  { %1995 = vsyncpa [#allocation7], 1 }
 0xfbc   :  { %1996 = vsyncpa [#allocation10], 1 }
 0xfbd   :  { %1997 = vsyncpa [#allocation13], 1 }
 0xfbe   :  { %1998 = vsyncpa [#allocation5], 1 }
 0xfbf   :  { %1999 = vsyncpa [#allocation17], 1 }

</bundles_post_ra>
